<compile_context>
chip_gen: v7x
topology: tpu7x:2x2x1
jax: 0.10.0
libtpu: 0.0.40
codegen_flags: <defaults>
</compile_context>

<pallas_src>
import functools

import jax
import jax.numpy as jnp
from jax import lax
from jax.experimental import pallas as pl
from jax.experimental.pallas import tpu as pltpu


def _online_lse_accumulate(sim, pos_raw, out_ref, m_sc, l_sc, ps_sc, pc_sc):
    """Online log-sum-exp + positive-pair accumulation over the column axis.

    sim:     [tb, tn] f32 = anchor . contrast / temperature for this (i, k) block.
    pos_raw: [tb, tn] bool/float positive-pair mask block (diagonal not yet removed).
    Writes mean_log_prob_pos for the row block at the last column step.
    """
    i = pl.program_id(0)
    k = pl.program_id(1)
    tb, tn = sim.shape

    @pl.when(k == 0)
    def _init():
        m_sc[...] = jnp.full(m_sc.shape, -jnp.inf, dtype=m_sc.dtype)
        l_sc[...] = jnp.zeros_like(l_sc)
        ps_sc[...] = jnp.zeros_like(ps_sc)
        pc_sc[...] = jnp.zeros_like(pc_sc)

    # Self-similarity mask from iotas (global anchor row == global contrast col);
    # no [Na, Nc] logits_mask array ever touches HBM.
    row_g = lax.broadcasted_iota(jnp.int32, (tb, tn), 0) + i * tb
    col_g = lax.broadcasted_iota(jnp.int32, (tb, tn), 1) + k * tn
    not_diag = row_g != col_g

    pos = jnp.where(not_diag, pos_raw.astype(jnp.float32), 0.0)

    # Online softmax denominator.  The max shift cancels analytically, so the
    # positive-pair sums below use the *unshifted* sim directly.
    m_prev = m_sc[...]
    m_new = jnp.maximum(m_prev, jnp.max(sim, axis=1, keepdims=True))
    # TODO(synk): bf16 exp on v6e/v7x once v5e support is not needed.
    e = jnp.where(not_diag, jnp.exp(sim - m_new), 0.0)
    l_sc[...] = l_sc[...] * jnp.exp(m_prev - m_new) + jnp.sum(e, axis=1, keepdims=True)
    m_sc[...] = m_new

    ps_sc[...] = ps_sc[...] + jnp.sum(pos * sim, axis=1, keepdims=True)
    pc_sc[...] = pc_sc[...] + jnp.sum(pos, axis=1, keepdims=True)

    @pl.when(k == pl.num_programs(1) - 1)
    def _finalize():
        pos_cnt = pc_sc[...]
        # sum(pos * log_prob) = sum(pos * sim) - pos_cnt * log(sum_nondiag exp(sim))
        log_denom = m_sc[...] + jnp.log(l_sc[...])
        safe_cnt = jnp.where(pos_cnt < 1e-6, 1.0, pos_cnt)
        out_ref[...] = (ps_sc[...] - pos_cnt * log_denom) / safe_cnt


def _supcon_labels_kernel(a_lab_ref, c_lab_ref, anchor_ref, contrast_ref,
                          out_ref, m_sc, l_sc, ps_sc, pc_sc, *, inv_temp):
    # Fold the temperature into the (tb, D) anchor tile instead of the (tb, tn) sim.
    # Python-float scalar keeps the ref dtype (bf16 stays bf16 for the MXU).
    a = anchor_ref[...] * inv_temp
    sim = lax.dot_general(a, contrast_ref[...], (((1,), (0,)), ((), ())),
                          preferred_element_type=jnp.float32)      # [tb, tn] f32
    # Positive mask rebuilt in-kernel from labels: [tb,1] == [1,tn] broadcast compare.
    pos_raw = a_lab_ref[...] == c_lab_ref[...]
    _online_lse_accumulate(sim, pos_raw, out_ref, m_sc, l_sc, ps_sc, pc_sc)


def _supcon_mask_kernel(anchor_ref, contrast_ref, mask_ref,
                        out_ref, m_sc, l_sc, ps_sc, pc_sc, *, inv_temp):
    # Fallback path for arbitrary user masks (mask streamed as bf16 tiles).
    a = anchor_ref[...] * inv_temp
    sim = lax.dot_general(a, contrast_ref[...], (((1,), (0,)), ((), ())),
                          preferred_element_type=jnp.float32)
    _online_lse_accumulate(sim, mask_ref[...], out_ref, m_sc, l_sc, ps_sc, pc_sc)


def _pick_tiles(n_anchor, n_contrast, dim, feat_bytes, has_mask,
                budget_bytes=36 * 1024 * 1024):
    """VMEM-aware tile selection.

    Prefers (a) row tiles >=128 with >=2 grid rows (MXU fill + megacore) and
    (b) the full contrast extent as the column tile so the [D, Nc] contrast
    block stays VMEM-resident and is DMA'd only once; otherwise the largest
    fitting column tile (contrast is then re-streamed per row tile).
    """
    def divisor_cands(n, prefs):
        cands = [p for p in prefs if p < n and n % p == 0]
        cands.append(n)                     # full extent is always layout-legal
        return cands

    def footprint(tb, tn):
        d_pad = max(dim, 8)
        total = 2 * tn * d_pad * feat_bytes          # contrast block (x2 buffers)
        total += 2 * tb * d_pad * feat_bytes         # anchor block
        if has_mask:
            total += 2 * tb * tn * 2                 # bf16 tiled-mask block
        else:
            total += 2 * (8 * tn * 4 + tb * 128 * 4)  # padded label vectors
        total += 6 * tb * tn * 4                     # live [tb, tn] f32 temporaries
        return total

    tb_cands = divisor_cands(n_anchor, (256, 128, 64, 32, 16, 8))
    tb_cands.sort(key=lambda tb: (0 if (tb >= 128 and n_anchor // tb >= 2) else 1, -tb))
    tn_cands = divisor_cands(n_contrast, (8192, 4096, 2048, 1024, 512, 256, 128))
    tn_cands.sort(key=lambda tn: (0 if tn == n_contrast else 1, -tn))

    for tb in tb_cands:
        for tn in tn_cands:
            if footprint(tb, tn) <= budget_bytes:
                return tb, tn
    return tb_cands[-1], tn_cands[-1]


def supcon_loss(features, labels=None, mask=None, *,
                temperature=0.07, contrast_mode='all', base_temperature=0.07,
                matmul_dtype=jnp.bfloat16, tile_rows=None, tile_cols=None):
    """features: [bsz, n_views, ...]; labels: [bsz] int; mask: [bsz, bsz]."""
    features = jnp.asarray(features)
    if features.ndim < 3:
        raise ValueError('`features` needs to be [bsz, n_views, ...]')
    bsz, n_views = features.shape[0], features.shape[1]
    feat = features.reshape(bsz, n_views, -1).astype(jnp.float32)
    dim = feat.shape[-1]

    if labels is not None and mask is not None:
        raise ValueError('Cannot define both `labels` and `mask`')

    # contrast_feature = cat(unbind(features, dim=1), dim=0)  -> [Nc, D]
    contrast = jnp.transpose(feat, (1, 0, 2)).reshape(n_views * bsz, dim)
    if contrast_mode == 'one':
        anchor = feat[:, 0, :]
        anchor_count = 1
    elif contrast_mode == 'all':
        anchor = contrast
        anchor_count = n_views
    else:
        raise ValueError('Unknown mode: {}'.format(contrast_mode))

    n_contrast = n_views * bsz
    n_anchor = anchor_count * bsz
    inv_temp = 1.0 / float(temperature)
    feat_bytes = jnp.dtype(matmul_dtype).itemsize

    # bf16 matmul operands (halved feature HBM stream, full MXU rate); the
    # contrast is pre-transposed to [D, Nc] so the kernel contracts (1,)x(0,).
    anchor_mm = anchor.astype(matmul_dtype)                      # [Na, D]
    contrast_t = jnp.transpose(contrast.astype(matmul_dtype))    # [D, Nc]

    tb, tn = _pick_tiles(n_anchor, n_contrast, dim, feat_bytes, mask is not None)
    if tile_rows is not None:
        tb = tile_rows
    if tile_cols is not None:
        tn = tile_cols
    assert n_anchor % tb == 0 and n_contrast % tn == 0, (tb, tn, n_anchor, n_contrast)
    grid = (n_anchor // tb, n_contrast // tn)
    contrast_passes = grid[0] if grid[1] > 1 else 1

    if mask is None:
        lab = (jnp.arange(bsz, dtype=jnp.int32) if labels is None
               else jnp.asarray(labels).reshape(-1).astype(jnp.int32))
        if lab.shape[0] != bsz:
            raise ValueError('Num of labels does not match num of features')
        c_lab = jnp.tile(lab, (n_views,)).reshape(1, n_contrast)       # [1, Nc]
        a_lab = jnp.tile(lab, (anchor_count,)).reshape(n_anchor, 1)    # [Na, 1]
        kernel = functools.partial(_supcon_labels_kernel, inv_temp=inv_temp)
        in_specs = [
            pl.BlockSpec((tb, 1), lambda i, k: (i, 0)),     # anchor labels
            pl.BlockSpec((1, tn), lambda i, k: (0, k)),     # contrast labels
            pl.BlockSpec((tb, dim), lambda i, k: (i, 0)),   # anchor rows
            pl.BlockSpec((dim, tn), lambda i, k: (0, k)),   # contrast columns
        ]
        args = (a_lab, c_lab, anchor_mm, contrast_t)
        side_bytes = 4 * (n_anchor + n_contrast)
    else:
        # Arbitrary-mask fallback: tile in the wrapper, stream as bf16.
        base_mask = jnp.asarray(mask).astype(jnp.bfloat16)
        full_mask = jnp.tile(base_mask, (anchor_count, n_views))       # [Na, Nc]
        kernel = functools.partial(_supcon_mask_kernel, inv_temp=inv_temp)
        in_specs = [
            pl.BlockSpec((tb, dim), lambda i, k: (i, 0)),
            pl.BlockSpec((dim, tn), lambda i, k: (0, k)),
            pl.BlockSpec((tb, tn), lambda i, k: (i, k)),
        ]
        args = (anchor_mm, contrast_t, full_mask)
        side_bytes = 2 * n_anchor * n_contrast

    cost = pl.CostEstimate(
        flops=2 * n_anchor * n_contrast * dim,
        transcendentals=n_anchor * n_contrast,
        bytes_accessed=(feat_bytes * dim * (n_anchor + n_contrast * contrast_passes)
                        + side_bytes + 4 * n_anchor))

    mean_log_prob_pos = pl.pallas_call(
        kernel,
        out_shape=jax.ShapeDtypeStruct((n_anchor, 1), jnp.float32),
        grid_spec=pltpu.PrefetchScalarGridSpec(
            num_scalar_prefetch=0,
            grid=grid,
            in_specs=in_specs,
            out_specs=pl.BlockSpec((tb, 1), lambda i, k: (i, 0)),
            scratch_shapes=[pltpu.VMEM((tb, 1), jnp.float32) for _ in range(4)],
        ),
        compiler_params=pltpu.CompilerParams(
            dimension_semantics=("parallel", "arbitrary"),
            vmem_limit_bytes=48 * 1024 * 1024,
        ),
        cost_estimate=cost,
    )(*args)

    # loss = -(T/base_T) * mean_log_prob_pos ; .view(anchor_count, bsz).mean()
    return -(temperature / base_temperature) * jnp.mean(mean_log_prob_pos)


def _supcon_ref(features, labels, temperature=0.07, base_temperature=0.07):
    """Pure-JAX f32 mirror of the PyTorch module (contrast_mode='all')."""
    bsz, n_views, dim = features.shape
    contrast = jnp.transpose(features, (1, 0, 2)).reshape(n_views * bsz, dim)
    mask = (labels[:, None] == labels[None, :]).astype(jnp.float32)
    mask = jnp.tile(mask, (n_views, n_views))
    n = n_views * bsz
    logits_all = (contrast @ contrast.T) / temperature
    logits_max = jnp.max(logits_all, axis=1, keepdims=True)
    logits = logits_all - logits_max
    logits_mask = 1.0 - jnp.eye(n, dtype=jnp.float32)
    mask = mask * logits_mask
    exp_logits = jnp.exp(logits) * logits_mask
    log_prob = logits - jnp.log(jnp.sum(exp_logits, axis=1, keepdims=True))
    pos_cnt = jnp.sum(mask, axis=1)
    pos_cnt = jnp.where(pos_cnt < 1e-6, 1.0, pos_cnt)
    mean_log_prob_pos = jnp.sum(mask * log_prob, axis=1) / pos_cnt
    loss = -(temperature / base_temperature) * mean_log_prob_pos
    return jnp.mean(loss)


if __name__ == "__main__":
    key = jax.random.PRNGKey(0)
    kf, kl = jax.random.split(key)

    # Small shapes consistent with the module: [bsz, n_views, feat_dim].
    BSZ, N_VIEWS, FEAT_DIM = 64, 2, 128
    feats = jax.random.normal(kf, (BSZ, N_VIEWS, FEAT_DIM), jnp.float32)
    feats = feats / jnp.linalg.norm(feats, axis=-1, keepdims=True)  # typical SupCon usage
    labels = jax.random.randint(kl, (BSZ,), 0, 4)

    # Supervised path (labels -> in-kernel positive mask).  bf16 matmul, so the
    # tolerance vs the f32 reference is relaxed accordingly.
    loss_sup = jax.block_until_ready(supcon_loss(feats, labels=labels))
    ref_sup = _supcon_ref(feats, labels)
    assert loss_sup.shape == ()
    assert bool(jnp.isfinite(loss_sup))
    assert jnp.allclose(loss_sup, ref_sup, atol=5e-2, rtol=5e-2), (float(loss_sup), float(ref_sup))

    # Unsupervised SimCLR path (labels=None -> identity positives), same kernel.
    loss_simclr = jax.block_until_ready(supcon_loss(feats))
    ref_simclr = _supcon_ref(feats, jnp.arange(BSZ))
    assert jnp.allclose(loss_simclr, ref_simclr, atol=5e-2, rtol=5e-2), (
        float(loss_simclr), float(ref_simclr))

    # Explicit-mask fallback path must agree with the labels path.
    user_mask = (labels[:, None] == labels[None, :]).astype(jnp.float32)
    loss_mask = jax.block_until_ready(supcon_loss(feats, mask=user_mask))
    assert jnp.allclose(loss_mask, ref_sup, atol=5e-2, rtol=5e-2), (
        float(loss_mask), float(ref_sup))

    print("KERNEL_OK")
</pallas_src>

<mosaic_0001>
module attributes {stable_mosaic.version = 11 : i64} {
  func.func @_supcon_labels_kernel(%arg0: i32, %arg1: i32, %arg2: memref<128x1xi32, #tpu.memory_space<vmem>>, %arg3: memref<1x128xi32, #tpu.memory_space<vmem>>, %arg4: memref<128x128xbf16, #tpu.memory_space<vmem>>, %arg5: memref<128x128xbf16, #tpu.memory_space<vmem>>, %arg6: memref<128x1xf32, #tpu.memory_space<vmem>>, %arg7: memref<128x1xf32, #tpu.memory_space<vmem>>, %arg8: memref<128x1xf32, #tpu.memory_space<vmem>>, %arg9: memref<128x1xf32, #tpu.memory_space<vmem>>, %arg10: memref<128x1xf32, #tpu.memory_space<vmem>>) attributes {dimension_semantics = [#tpu.dimension_semantics<parallel>, #tpu.dimension_semantics<arbitrary>], iteration_bounds = array<i64: 1, 1>, scalar_prefetch = 0 : i64, scratch_operands = 4 : i64, tpu.core_type = #tpu.core_type<tc>, window_params = [{transform_indices = @transform_0, window_bounds = array<i64: 128, 1>}, {transform_indices = @transform_1, window_bounds = array<i64: 1, 128>}, {transform_indices = @transform_2, window_bounds = array<i64: 128, 128>}, {transform_indices = @transform_3, window_bounds = array<i64: 128, 128>}, {transform_indices = @transform_4, window_bounds = array<i64: 128, 1>}]} {
    %c0 = arith.constant 0 : index
    %c0_0 = arith.constant 0 : index
    %0 = vector.load %arg4[%c0, %c0_0] : memref<128x128xbf16, #tpu.memory_space<vmem>>, vector<128x128xbf16>
    %cst = arith.constant 1.431250e+01 : bf16
    %1 = vector.broadcast %cst : bf16 to vector<128x128xbf16>
    %2 = arith.mulf %0, %1 : vector<128x128xbf16>
    %c0_1 = arith.constant 0 : index
    %c0_2 = arith.constant 0 : index
    %3 = vector.load %arg5[%c0_1, %c0_2] : memref<128x128xbf16, #tpu.memory_space<vmem>>, vector<128x128xbf16>
    %cst_3 = arith.constant dense<0.000000e+00> : vector<128x128xf32>
    %4 = tpu.matmul %2, %3, %cst_3 {dimension_numbers = #tpu.dot_dimension_numbers<[1], [0], [0], [1], [0, 0, 1, 1], [], []>} : vector<128x128xbf16>, vector<128x128xbf16>, vector<128x128xf32> -> vector<128x128xf32>
    %c0_4 = arith.constant 0 : index
    %c0_5 = arith.constant 0 : index
    %5 = vector.load %arg2[%c0_4, %c0_5] : memref<128x1xi32, #tpu.memory_space<vmem>>, vector<128x1xi32>
    %c0_6 = arith.constant 0 : index
    %c0_7 = arith.constant 0 : index
    %6 = vector.load %arg3[%c0_6, %c0_7] : memref<1x128xi32, #tpu.memory_space<vmem>>, vector<1x128xi32>
    %7 = vector.broadcast %5 : vector<128x1xi32> to vector<128x128xi32>
    %8 = vector.broadcast %6 : vector<1x128xi32> to vector<128x128xi32>
    %9 = arith.cmpi eq, %7, %8 : vector<128x128xi32>
    %c0_i32 = arith.constant 0 : i32
    %10 = arith.cmpi eq, %arg1, %c0_i32 : i32
    %11 = arith.extui %10 : i1 to i32
    %c0_i32_8 = arith.constant 0 : i32
    %12 = arith.cmpi ne, %11, %c0_i32_8 : i32
    scf.if %12 {
      %cst_34 = arith.constant 0xFF800000 : f32
      %58 = vector.broadcast %cst_34 : f32 to vector<128x1xf32>
      %c0_35 = arith.constant 0 : index
      %c0_36 = arith.constant 0 : index
      %59 = vector.load %arg7[%c0_35, %c0_36] : memref<128x1xf32, #tpu.memory_space<vmem>>, vector<128x1xf32>
      tpu.vector_store %arg7[%c0_35, %c0_36], %58 {strides = array<i32>} : memref<128x1xf32, #tpu.memory_space<vmem>>, vector<128x1xf32>,
      %cst_37 = arith.constant 0.000000e+00 : f32
      %60 = vector.broadcast %cst_37 : f32 to vector<128x1xf32>
      %c0_38 = arith.constant 0 : index
      %c0_39 = arith.constant 0 : index
      %61 = vector.load %arg8[%c0_38, %c0_39] : memref<128x1xf32, #tpu.memory_space<vmem>>, vector<128x1xf32>
      tpu.vector_store %arg8[%c0_38, %c0_39], %60 {strides = array<i32>} : memref<128x1xf32, #tpu.memory_space<vmem>>, vector<128x1xf32>,
      %cst_40 = arith.constant 0.000000e+00 : f32
      %62 = vector.broadcast %cst_40 : f32 to vector<128x1xf32>
      %c0_41 = arith.constant 0 : index
      %c0_42 = arith.constant 0 : index
      %63 = vector.load %arg9[%c0_41, %c0_42] : memref<128x1xf32, #tpu.memory_space<vmem>>, vector<128x1xf32>
      tpu.vector_store %arg9[%c0_41, %c0_42], %62 {strides = array<i32>} : memref<128x1xf32, #tpu.memory_space<vmem>>, vector<128x1xf32>,
      %cst_43 = arith.constant 0.000000e+00 : f32
      %64 = vector.broadcast %cst_43 : f32 to vector<128x1xf32>
      %c0_44 = arith.constant 0 : index
      %c0_45 = arith.constant 0 : index
      %65 = vector.load %arg10[%c0_44, %c0_45] : memref<128x1xf32, #tpu.memory_space<vmem>>, vector<128x1xf32>
      tpu.vector_store %arg10[%c0_44, %c0_45], %64 {strides = array<i32>} : memref<128x1xf32, #tpu.memory_space<vmem>>, vector<128x1xf32>,
    } else {
    }
    %13 = tpu.iota {dimensions = array<i32: 0>} : vector<128x128xi32>
    %c128_i32 = arith.constant 128 : i32
    %14 = arith.muli %arg0, %c128_i32 : i32
    %15 = vector.broadcast %14 : i32 to vector<128x128xi32>
    %16 = arith.addi %13, %15 : vector<128x128xi32>
    %17 = tpu.iota {dimensions = array<i32: 1>} : vector<128x128xi32>
    %c128_i32_9 = arith.constant 128 : i32
    %18 = arith.muli %arg1, %c128_i32_9 : i32
    %19 = vector.broadcast %18 : i32 to vector<128x128xi32>
    %20 = arith.addi %17, %19 : vector<128x128xi32>
    %21 = arith.cmpi ne, %16, %20 : vector<128x128xi32>
    %22 = arith.extui %9 : vector<128x128xi1> to vector<128x128xi32>
    %23 = arith.sitofp %22 : vector<128x128xi32> to vector<128x128xf32>
    %cst_10 = arith.constant 0.000000e+00 : f32
    %24 = vector.broadcast %cst_10 : f32 to vector<128x128xf32>
    %25 = arith.select %21, %23, %24 : vector<128x128xi1>, vector<128x128xf32>
    %c0_11 = arith.constant 0 : index
    %c0_12 = arith.constant 0 : index
    %26 = vector.load %arg7[%c0_11, %c0_12] : memref<128x1xf32, #tpu.memory_space<vmem>>, vector<128x1xf32>
    %cst_13 = arith.constant dense<0xFF800000> : vector<128xf32>
    %27 = vector.multi_reduction <maximumf>, %4, %cst_13 [1] : vector<128x128xf32> to vector<128xf32>
    %28 = vector.shape_cast %27 : vector<128xf32> to vector<128x1xf32>
    %29 = arith.maximumf %26, %28 : vector<128x1xf32>
    %30 = vector.broadcast %29 : vector<128x1xf32> to vector<128x128xf32>
    %31 = arith.subf %4, %30 : vector<128x128xf32>
    %32 = math.exp %31 : vector<128x128xf32>
    %cst_14 = arith.constant 0.000000e+00 : f32
    %33 = vector.broadcast %cst_14 : f32 to vector<128x128xf32>
    %34 = arith.select %21, %32, %33 : vector<128x128xi1>, vector<128x128xf32>
    %c0_15 = arith.constant 0 : index
    %c0_16 = arith.constant 0 : index
    %35 = vector.load %arg8[%c0_15, %c0_16] : memref<128x1xf32, #tpu.memory_space<vmem>>, vector<128x1xf32>
    %36 = arith.subf %26, %29 : vector<128x1xf32>
    %37 = math.exp %36 : vector<128x1xf32>
    %38 = arith.mulf %35, %37 : vector<128x1xf32>
    %cst_17 = arith.constant dense<0.000000e+00> : vector<128xf32>
    %39 = vector.multi_reduction <add>, %34, %cst_17 [1] : vector<128x128xf32> to vector<128xf32>
    %40 = vector.shape_cast %39 : vector<128xf32> to vector<128x1xf32>
    %41 = arith.addf %38, %40 : vector<128x1xf32>
    %c0_18 = arith.constant 0 : index
    %c0_19 = arith.constant 0 : index
    %42 = vector.load %arg8[%c0_18, %c0_19] : memref<128x1xf32, #tpu.memory_space<vmem>>, vector<128x1xf32>
    tpu.vector_store %arg8[%c0_18, %c0_19], %41 {strides = array<i32>} : memref<128x1xf32, #tpu.memory_space<vmem>>, vector<128x1xf32>,
    %c0_20 = arith.constant 0 : index
    %c0_21 = arith.constant 0 : index
    %43 = vector.load %arg7[%c0_20, %c0_21] : memref<128x1xf32, #tpu.memory_space<vmem>>, vector<128x1xf32>
    tpu.vector_store %arg7[%c0_20, %c0_21], %29 {strides = array<i32>} : memref<128x1xf32, #tpu.memory_space<vmem>>, vector<128x1xf32>,
    %c0_22 = arith.constant 0 : index
    %c0_23 = arith.constant 0 : index
    %44 = vector.load %arg9[%c0_22, %c0_23] : memref<128x1xf32, #tpu.memory_space<vmem>>, vector<128x1xf32>
    %45 = arith.mulf %25, %4 : vector<128x128xf32>
    %cst_24 = arith.constant dense<0.000000e+00> : vector<128xf32>
    %46 = vector.multi_reduction <add>, %45, %cst_24 [1] : vector<128x128xf32> to vector<128xf32>
    %47 = vector.shape_cast %46 : vector<128xf32> to vector<128x1xf32>
    %48 = arith.addf %44, %47 : vector<128x1xf32>
    %c0_25 = arith.constant 0 : index
    %c0_26 = arith.constant 0 : index
    %49 = vector.load %arg9[%c0_25, %c0_26] : memref<128x1xf32, #tpu.memory_space<vmem>>, vector<128x1xf32>
    tpu.vector_store %arg9[%c0_25, %c0_26], %48 {strides = array<i32>} : memref<128x1xf32, #tpu.memory_space<vmem>>, vector<128x1xf32>,
    %c0_27 = arith.constant 0 : index
    %c0_28 = arith.constant 0 : index
    %50 = vector.load %arg10[%c0_27, %c0_28] : memref<128x1xf32, #tpu.memory_space<vmem>>, vector<128x1xf32>
    %cst_29 = arith.constant dense<0.000000e+00> : vector<128xf32>
    %51 = vector.multi_reduction <add>, %25, %cst_29 [1] : vector<128x128xf32> to vector<128xf32>
    %52 = vector.shape_cast %51 : vector<128xf32> to vector<128x1xf32>
    %53 = arith.addf %50, %52 : vector<128x1xf32>
    %c0_30 = arith.constant 0 : index
    %c0_31 = arith.constant 0 : index
    %54 = vector.load %arg10[%c0_30, %c0_31] : memref<128x1xf32, #tpu.memory_space<vmem>>, vector<128x1xf32>
    tpu.vector_store %arg10[%c0_30, %c0_31], %53 {strides = array<i32>} : memref<128x1xf32, #tpu.memory_space<vmem>>, vector<128x1xf32>,
    %c0_i32_32 = arith.constant 0 : i32
    %55 = arith.cmpi eq, %arg1, %c0_i32_32 : i32
    %56 = arith.extui %55 : i1 to i32
    %c0_i32_33 = arith.constant 0 : i32
    %57 = arith.cmpi ne, %56, %c0_i32_33 : i32
    scf.if %57 {
      %c0_34 = arith.constant 0 : index
      %c0_35 = arith.constant 0 : index
      %58 = vector.load %arg10[%c0_34, %c0_35] : memref<128x1xf32, #tpu.memory_space<vmem>>, vector<128x1xf32>
      %c0_36 = arith.constant 0 : index
      %c0_37 = arith.constant 0 : index
      %59 = vector.load %arg7[%c0_36, %c0_37] : memref<128x1xf32, #tpu.memory_space<vmem>>, vector<128x1xf32>
      %c0_38 = arith.constant 0 : index
      %c0_39 = arith.constant 0 : index
      %60 = vector.load %arg8[%c0_38, %c0_39] : memref<128x1xf32, #tpu.memory_space<vmem>>, vector<128x1xf32>
      %61 = math.log %60 : vector<128x1xf32>
      %62 = arith.addf %59, %61 : vector<128x1xf32>
      %cst_40 = arith.constant 9.99999997E-7 : f32
      %63 = vector.broadcast %cst_40 : f32 to vector<128x1xf32>
      %64 = arith.cmpf olt, %58, %63 : vector<128x1xf32>
      %cst_41 = arith.constant 1.000000e+00 : f32
      %65 = vector.broadcast %cst_41 : f32 to vector<128x1xf32>
      %66 = arith.select %64, %65, %58 : vector<128x1xi1>, vector<128x1xf32>
      %c0_42 = arith.constant 0 : index
      %c0_43 = arith.constant 0 : index
      %67 = vector.load %arg9[%c0_42, %c0_43] : memref<128x1xf32, #tpu.memory_space<vmem>>, vector<128x1xf32>
      %68 = arith.mulf %58, %62 : vector<128x1xf32>
      %69 = arith.subf %67, %68 : vector<128x1xf32>
      %70 = arith.divf %69, %66 : vector<128x1xf32>
      %c0_44 = arith.constant 0 : index
      %c0_45 = arith.constant 0 : index
      %71 = vector.load %arg6[%c0_44, %c0_45] : memref<128x1xf32, #tpu.memory_space<vmem>>, vector<128x1xf32>
      tpu.vector_store %arg6[%c0_44, %c0_45], %70 {strides = array<i32>} : memref<128x1xf32, #tpu.memory_space<vmem>>, vector<128x1xf32>,
    } else {
    }
    return
  }
  func.func @transform_0(%arg0: i32, %arg1: i32) -> (i32, i32) {
    %c0_i32 = arith.constant 0 : i32
    %c0_i32_0 = arith.constant 0 : i32
    return %arg0, %c0_i32 : i32, i32
  }
  func.func @transform_1(%arg0: i32, %arg1: i32) -> (i32, i32) {
    %c0_i32 = arith.constant 0 : i32
    %c0_i32_0 = arith.constant 0 : i32
    return %c0_i32, %arg1 : i32, i32
  }
  func.func @transform_2(%arg0: i32, %arg1: i32) -> (i32, i32) {
    %c0_i32 = arith.constant 0 : i32
    %c0_i32_0 = arith.constant 0 : i32
    return %arg0, %c0_i32 : i32, i32
  }
  func.func @transform_3(%arg0: i32, %arg1: i32) -> (i32, i32) {
    %c0_i32 = arith.constant 0 : i32
    %c0_i32_0 = arith.constant 0 : i32
    return %c0_i32, %arg1 : i32, i32
  }
  func.func @transform_4(%arg0: i32, %arg1: i32) -> (i32, i32) {
    %c0_i32 = arith.constant 0 : i32
    %c0_i32_0 = arith.constant 0 : i32
    return %arg0, %c0_i32 : i32, i32
  }
}

</mosaic_0001>

<bundles_post_ra>
// kernel: tpu_custom_call.1
= control target key start
LH: loop header
LB: loop body
LE: loop exit
PB: predicated region body
PF: predicated region fallthrough
CT: control target
= control target key end

     0   :  { %v1532_v1 = vmov 0   ;;  %v414_v57 = vlaneseq  ;;  %v2619_v62 = vmov 0.0   ;;  %vm2649_vm2 = vcmask 7168   ;;  %s2614_s3 = inlined_call_operand.vmem [shape: bf16[128,128], index: 3, kind: input, shape index: {}]   ;;  %s2615_s2 = inlined_call_operand.vmem [shape: bf16[128,128], index: 2, kind: input, shape index: {}]   ;;  %s2616_s0 = inlined_call_operand.vmem [shape: s32[128,1], index: 0, kind: input, shape index: {}]   ;;  %s2617_s1 = inlined_call_operand.vmem [shape: s32[1,128], index: 1, kind: input, shape index: {}]   ;;  %s2618_s4 = inlined_call_operand.vmem [shape: f32[128,1], index: 4, kind: output, shape index: {}]  }
   0x1   :  { %v1396_v0 = vld [vmem:[%s2614_s3] sm:$0xff]   ;;  %1395 = vset.pattern.permute.xlu1 %v1532_v1  ;;  %1394 = vset.pattern.permute.xlu0 %v1532_v1  ;;  %v1397_v2 = vld [vmem:[%s2614_s3 + $0x8] sm:$0xff]   ;;  %v1398_v3 = vld [vmem:[%s2614_s3 + $0x10] sm:$0xff]   ;;  %398 = vst.msk [vmem:[#allocation5] sm:$0xff] %vm2649_vm2, %v2619_v62  ;;  %v1534_v1 = vmov -inf  }
   0x2   :  { %1343 = vmatprep.subr.bf16.mxu0 %v1396_v0  ;;  %1375 = vmatprep.subr.bf16.mxu1 %v1396_v0  ;;  %v1399_v4 = vld [vmem:[%s2614_s3 + $0x18] sm:$0xff]   ;;  %v19_v5 = vld [vmem:[%s2615_s2] sm:$0xf]  ;;  %v20_v6 = vld [vmem:[%s2615_s2 + $0x4] sm:$0xf]  ;;  %v1656_v58 = vshrl.u32 %v414_v57, 7 }
   0x3   :  { %1344 = vmatpush3.bf16.msra.mxu0 %v1396_v0  ;;  %1383 = vmatpush3.bf16.msra.mxu1 %v1396_v0  ;;  %v35_v7 = vmul.bf16 1097154917, %v19_v5  ;;  %v36_v8 = vmul.bf16 1097154917, %v20_v6  ;;  %v27_v9 = vld [vmem:[%s2615_s2 + $0x20] sm:$0xf] }
   0x4   :  { %1345 = vmatprep.subr.bf16.mxu0 %v1397_v2  ;;  %1376 = vmatprep.subr.bf16.mxu1 %v1397_v2  ;;  %v28_v11 = vld [vmem:[%s2615_s2 + $0x24] sm:$0xf]  ;;  %v43_v12 = vmul.bf16 1097154917, %v27_v9  ;;  %v1401_v16 = vld [vmem:[%s2614_s3 + $0x28] sm:$0xff]   ;;  %v262_v17 = vld [vmem:[%s2616_s0 + $0x10] sm:$0xff] }
   0x5   :  { %v1294_v10 = vcombine.low %v35_v7, %v36_v8  ;;  %v1400_v13 = vld [vmem:[%s2614_s3 + $0x20] sm:$0xff]   ;;  %v44_v14 = vmul.bf16 1097154917, %v28_v11  ;;  %v1402_v19 = vld [vmem:[%s2614_s3 + $0x30] sm:$0xff]   ;;  %v21_v20 = vld [vmem:[%s2615_s2 + $0x8] sm:$0xf]  ;;  %284 = vperm.xlu1 %1395, %v262_v17  }
   0x6   :  { %v260_v18 = vld [vmem:[%s2616_s0] sm:$0xff]  ;;  %v22_v21 = vld [vmem:[%s2615_s2 + $0xc] sm:$0xf]  ;;  %v29_v22 = vld [vmem:[%s2615_s2 + $0x28] sm:$0xf]  ;;  %v1658_v59 = vand.u32 127, %v414_v57 }
   0x7   :  { %1346 = vmatpush3.bf16.msra.mxu0 %v1397_v2  ;;  %1384 = vmatpush3.bf16.msra.mxu1 %v1397_v2  ;;  %v1298_v15 = vcombine.low %v43_v12, %v44_v14  ;;  %v263_v23 = vld [vmem:[%s2616_s0 + $0x18] sm:$0xff]  ;;  %v261_v24 = vld [vmem:[%s2616_s0 + $0x8] sm:$0xff]  ;;  %v23_v27 = vld [vmem:[%s2615_s2 + $0x10] sm:$0xf]  ;;  %v37_v31 = vmul.bf16 1097154917, %v21_v20 }
   0x8   :  { %1347 = vmatprep.subr.bf16.mxu0 %v1398_v3  ;;  %1377 = vmatprep.subr.bf16.mxu1 %v1398_v3  ;;  %v1403_v25 = vld [vmem:[%s2614_s3 + $0x38] sm:$0xff]   ;;  %v30_v26 = vld [vmem:[%s2615_s2 + $0x2c] sm:$0xf]  ;;  %v24_v28 = vld [vmem:[%s2615_s2 + $0x14] sm:$0xf]  ;;  %vm454_vm0 = vcmp.ne.s32.totalorder %v1656_v58, %v1658_v59  ;;  %366 = vst.msk [vmem:[#allocation3] sm:$0xff] %vm2649_vm2, %v2619_v62 }
   0x9   :  { %1359 = vmatprep.mubr.bf16.mxu0 %v1294_v10  ;;  %1367 = vmatprep.mubr.bf16.mxu1 %v1298_v15  ;;  %v31_v29 = vld [vmem:[%s2615_s2 + $0x30] sm:$0xf]  ;;  %v32_v30 = vld [vmem:[%s2615_s2 + $0x34] sm:$0xf]  ;;  %v38_v32 = vmul.bf16 1097154917, %v22_v21 }
   0xa   :  { %278 = vperm.xlu0 %1394, %v260_v18   ;;  %v45_v33 = vmul.bf16 1097154917, %v29_v22  ;;  %287 = vperm.xlu1 %1395, %v263_v23   ;;  %v46_v34 = vmul.bf16 1097154917, %v30_v26  ;;  %v39_v35 = vmul.bf16 1097154917, %v23_v27 }
   0xb   :  { %1348 = vmatpush3.bf16.msra.mxu0 %v1398_v3  ;;  %1385 = vmatpush3.bf16.msra.mxu1 %v1398_v3  ;;  %v265_v36 = vld [vmem:[%s2616_s0 + $0x28] sm:$0xff]  ;;  %v40_v37 = vmul.bf16 1097154917, %v24_v28  ;;  %v47_v38 = vmul.bf16 1097154917, %v31_v29  ;;  %v1295_v40 = vcombine.low %v37_v31, %v38_v32  ;;  %v267_v44 = vld [vmem:[%s2616_s0 + $0x38] sm:$0xff] }
   0xc   :  { %1349 = vmatprep.subr.bf16.mxu0 %v1399_v4  ;;  %1378 = vmatprep.subr.bf16.mxu1 %v1399_v4  ;;  %v48_v39 = vmul.bf16 1097154917, %v32_v30  ;;  %v1299_v41 = vcombine.low %v45_v33, %v46_v34  ;;  %v25_v42 = vld [vmem:[%s2615_s2 + $0x18] sm:$0xf]  ;;  %v26_v43 = vld [vmem:[%s2615_s2 + $0x1c] sm:$0xf] }
   0xd   :  { %v1296_v45 = vcombine.low %v39_v35, %v40_v37  ;;  %v33_v47 = vld [vmem:[%s2615_s2 + $0x38] sm:$0xf]  ;;  %v34_v48 = vld [vmem:[%s2615_s2 + $0x3c] sm:$0xf]  ;;  %v41_v49 = vmul.bf16 1097154917, %v25_v42 }
   0xe   :  { %281 = vperm.xlu0 %1394, %v261_v24   ;;  %293 = vperm.xlu1 %1395, %v265_v36   ;;  %v1300_v46 = vcombine.low %v47_v38, %v48_v39  ;;  %v42_v50 = vmul.bf16 1097154917, %v26_v43  ;;  %v49_v51 = vmul.bf16 1097154917, %v33_v47  ;;  %v50_v52 = vmul.bf16 1097154917, %v34_v48 }
   0xf   :  { %1350 = vmatpush3.bf16.msra.mxu0 %v1399_v4  ;;  %1386 = vmatpush3.bf16.msra.mxu1 %v1399_v4  ;;  %v269_v53 = vld [vmem:[%s2616_s0 + $0x48] sm:$0xff]  ;;  %v272_v56 = vld [vmem:[%s2616_s0 + $0x60] sm:$0xff]  ;;  %367 = vst.msk [vmem:[#allocation3 + $0x8] sm:$0xff] %vm2649_vm2, %v2619_v62  ;;  %368 = vst.msk [vmem:[#allocation3 + $0x10] sm:$0xff] %vm2649_vm2, %v2619_v62  ;;  %v1788_v3 = vadd.s32 16, %v1656_v58  ;;  %v1792_v5 = vadd.s32 24, %v1656_v58 }
  0x10   :  { %1351 = vmatprep.subr.bf16.mxu0 %v1400_v13  ;;  %1379 = vmatprep.subr.bf16.mxu1 %v1400_v13  ;;  %v1297_v54 = vcombine.low %v41_v49, %v42_v50  ;;  %v1301_v55 = vcombine.low %v49_v51, %v50_v52  ;;  %v1663_v60 = vld [vmem:[%s2617_s1] ss:$0 sm:$0xff]  ;;  %369 = vst.msk [vmem:[#allocation3 + $0x18] sm:$0xff] %vm2649_vm2, %v2619_v62  ;;  %370 = vst.msk [vmem:[#allocation3 + $0x20] sm:$0xff] %vm2649_vm2, %v2619_v62  ;;  %v1799_v8 = vadd.s32 8, %v1656_v58  ;;  %v275_v43 = vld [vmem:[%s2616_s0 + $0x78] sm:$0xff] }
  0x11   :  { %371 = vst.msk [vmem:[#allocation3 + $0x28] sm:$0xff] %vm2649_vm2, %v2619_v62  ;;  %372 = vst.msk [vmem:[#allocation3 + $0x30] sm:$0xff] %vm2649_vm2, %v2619_v62  ;;  %vm456_vm5 = vcmp.ne.s32.totalorder %v1788_v3, %v1658_v59  ;;  %vm457_vm7 = vcmp.ne.s32.totalorder %v1792_v5, %v1658_v59  ;;  %v1837_v21 = vadd.s32 40, %v1656_v58  ;;  %v983_v42 = vld [vmem:[#allocation5] sm:$0xff]  ;;  %v266_v47 = vld [vmem:[%s2616_s0 + $0x30] sm:$0xff] }
  0x12   :  { %299 = vperm.xlu1 %1395, %v267_v44   ;;  %373 = vst.msk [vmem:[#allocation3 + $0x38] sm:$0xff] %vm2649_vm2, %v2619_v62  ;;  %374 = vst.msk [vmem:[#allocation3 + $0x40] sm:$0xff] %vm2649_vm2, %v2619_v62  ;;  %vm455_vm8 = vcmp.ne.s32.totalorder %v1799_v8, %v1658_v59  ;;  %v268_v48 = vld [vmem:[%s2616_s0 + $0x40] sm:$0xff]  ;;  %v270_v49 = vld [vmem:[%s2616_s0 + $0x50] sm:$0xff] }
  0x13   :  { %1352 = vmatpush3.bf16.msra.mxu0 %v1400_v13  ;;  %1387 = vmatpush3.bf16.msra.mxu1 %v1400_v13  ;;  %375 = vst.msk [vmem:[#allocation3 + $0x48] sm:$0xff] %vm2649_vm2, %v2619_v62  ;;  %376 = vst.msk [vmem:[#allocation3 + $0x50] sm:$0xff] %vm2649_vm2, %v2619_v62  ;;  %vm459_vm10 = vcmp.ne.s32.totalorder %v1837_v21, %v1658_v59  ;;  %v271_v50 = vld [vmem:[%s2616_s0 + $0x58] sm:$0xff]  ;;  %v274_v51 = vld [vmem:[%s2616_s0 + $0x70] sm:$0xff] }
  0x14   :  { %1353 = vmatprep.subr.bf16.mxu0 %v1401_v16  ;;  %1380 = vmatprep.subr.bf16.mxu1 %v1401_v16  ;;  %377 = vst.msk [vmem:[#allocation3 + $0x58] sm:$0xff] %vm2649_vm2, %v2619_v62  ;;  %378 = vst.msk [vmem:[#allocation3 + $0x60] sm:$0xff] %vm2649_vm2, %v2619_v62 }
  0x15   :  { %379 = vst.msk [vmem:[#allocation3 + $0x68] sm:$0xff] %vm2649_vm2, %v2619_v62  ;;  %380 = vst.msk [vmem:[#allocation3 + $0x70] sm:$0xff] %vm2649_vm2, %v2619_v62 }
  0x16   :  { %305 = vperm.xlu1 %1395, %v269_v53   ;;  %381 = vst.msk [vmem:[#allocation3 + $0x78] sm:$0xff] %vm2649_vm2, %v2619_v62  ;;  %382 = vst.msk [vmem:[#allocation4] sm:$0xff] %vm2649_vm2, %v2619_v62 }
  0x17   :  { %1354 = vmatpush3.bf16.msra.mxu0 %v1401_v16  ;;  %1388 = vmatpush3.bf16.msra.mxu1 %v1401_v16  ;;  %383 = vst.msk [vmem:[#allocation4 + $0x8] sm:$0xff] %vm2649_vm2, %v2619_v62  ;;  %384 = vst.msk [vmem:[#allocation4 + $0x10] sm:$0xff] %vm2649_vm2, %v2619_v62 }
  0x18   :  { %1355 = vmatprep.subr.bf16.mxu0 %v1402_v19  ;;  %1381 = vmatprep.subr.bf16.mxu1 %v1402_v19  ;;  %385 = vst.msk [vmem:[#allocation4 + $0x18] sm:$0xff] %vm2649_vm2, %v2619_v62  ;;  %386 = vst.msk [vmem:[#allocation4 + $0x20] sm:$0xff] %vm2649_vm2, %v2619_v62 }
  0x19   :  { %387 = vst.msk [vmem:[#allocation4 + $0x28] sm:$0xff] %vm2649_vm2, %v2619_v62  ;;  %388 = vst.msk [vmem:[#allocation4 + $0x30] sm:$0xff] %vm2649_vm2, %v2619_v62 }
  0x1a   :  { %314 = vperm.xlu1 %1395, %v272_v56   ;;  %389 = vst.msk [vmem:[#allocation4 + $0x38] sm:$0xff] %vm2649_vm2, %v2619_v62  ;;  %390 = vst.msk [vmem:[#allocation4 + $0x40] sm:$0xff] %vm2649_vm2, %v2619_v62 }
  0x1b   :  { %1356 = vmatpush3.bf16.msra.mxu0 %v1402_v19  ;;  %1389 = vmatpush3.bf16.msra.mxu1 %v1402_v19  ;;  %391 = vst.msk [vmem:[#allocation4 + $0x48] sm:$0xff] %vm2649_vm2, %v2619_v62  ;;  %392 = vst.msk [vmem:[#allocation4 + $0x50] sm:$0xff] %vm2649_vm2, %v2619_v62 }
  0x1c   :  { %1357 = vmatprep.subr.bf16.mxu0 %v1403_v25  ;;  %1382 = vmatprep.subr.bf16.mxu1 %v1403_v25  ;;  %393 = vst.msk [vmem:[#allocation4 + $0x58] sm:$0xff] %vm2649_vm2, %v2619_v62  ;;  %394 = vst.msk [vmem:[#allocation4 + $0x60] sm:$0xff] %vm2649_vm2, %v2619_v62 }
  0x1d   :  { %395 = vst.msk [vmem:[#allocation4 + $0x68] sm:$0xff] %vm2649_vm2, %v2619_v62  ;;  %396 = vst.msk [vmem:[#allocation4 + $0x70] sm:$0xff] %vm2649_vm2, %v2619_v62 }
  0x1e   :  { %397 = vst.msk [vmem:[#allocation4 + $0x78] sm:$0xff] %vm2649_vm2, %v2619_v62  ;;  %399 = vst.msk [vmem:[#allocation5 + $0x8] sm:$0xff] %vm2649_vm2, %v2619_v62 }
  0x1f   :  { %1358 = vmatpush3.bf16.msra.mxu0 %v1403_v25  ;;  %1390 = vmatpush3.bf16.msra.mxu1 %v1403_v25  ;;  %400 = vst.msk [vmem:[#allocation5 + $0x10] sm:$0xff] %vm2649_vm2, %v2619_v62  ;;  %401 = vst.msk [vmem:[#allocation5 + $0x18] sm:$0xff] %vm2649_vm2, %v2619_v62 }
  0x20   :  { %402 = vst.msk [vmem:[#allocation5 + $0x20] sm:$0xff] %vm2649_vm2, %v2619_v62  ;;  %403 = vst.msk [vmem:[#allocation5 + $0x28] sm:$0xff] %vm2649_vm2, %v2619_v62 }
  0x21   :  { %404 = vst.msk [vmem:[#allocation5 + $0x30] sm:$0xff] %vm2649_vm2, %v2619_v62  ;;  %405 = vst.msk [vmem:[#allocation5 + $0x38] sm:$0xff] %vm2649_vm2, %v2619_v62 }
  0x22   :  { %1360 = vmatmul.mubr.bf16.vlgmr.msra.gmra.mrb[0].mxu0 %v1295_v40  ;;  %1368 = vmatmul.mubr.bf16.vlgmr.msra.gmra.mrb[0].mxu1 %v1299_v41  ;;  %406 = vst.msk [vmem:[#allocation5 + $0x40] sm:$0xff] %vm2649_vm2, %v2619_v62  ;;  %407 = vst.msk [vmem:[#allocation5 + $0x48] sm:$0xff] %vm2649_vm2, %v2619_v62  ;;  %v273_v41 = vld [vmem:[%s2616_s0 + $0x68] sm:$0xff] }
  0x23   :  { %1363 = vmatprep.mubr.bf16.mxu0 %v1296_v45  ;;  %1371 = vmatprep.mubr.bf16.mxu1 %v1300_v46  ;;  %408 = vst.msk [vmem:[#allocation5 + $0x50] sm:$0xff] %vm2649_vm2, %v2619_v62  ;;  %409 = vst.msk [vmem:[#allocation5 + $0x58] sm:$0xff] %vm2649_vm2, %v2619_v62  ;;  %v264_v46 = vld [vmem:[%s2616_s0 + $0x20] sm:$0xff] }
  0x24   :  { %410 = vst.msk [vmem:[#allocation5 + $0x60] sm:$0xff] %vm2649_vm2, %v2619_v62  ;;  %411 = vst.msk [vmem:[#allocation5 + $0x68] sm:$0xff] %vm2649_vm2, %v2619_v62 }
  0x25   :  { %412 = vst.msk [vmem:[#allocation5 + $0x70] sm:$0xff] %vm2649_vm2, %v2619_v62  ;;  %413 = vst.msk [vmem:[#allocation5 + $0x78] sm:$0xff] %vm2649_vm2, %v2619_v62 }
  0x26   :  { %352 = vst.msk [vmem:[#allocation2 + $0x10] sm:$0xff] %vm2649_vm2, %v1534_v1  ;;  %350 = vst.msk [vmem:[#allocation2] sm:$0xff] %vm2649_vm2, %v1534_v1 }
  0x27   :  { %351 = vst.msk [vmem:[#allocation2 + $0x8] sm:$0xff] %vm2649_vm2, %v1534_v1  ;;  %353 = vst.msk [vmem:[#allocation2 + $0x18] sm:$0xff] %vm2649_vm2, %v1534_v1 }
  0x28   :  { %354 = vst.msk [vmem:[#allocation2 + $0x20] sm:$0xff] %vm2649_vm2, %v1534_v1  ;;  %355 = vst.msk [vmem:[#allocation2 + $0x28] sm:$0xff] %vm2649_vm2, %v1534_v1 }
  0x29   :  { %356 = vst.msk [vmem:[#allocation2 + $0x30] sm:$0xff] %vm2649_vm2, %v1534_v1  ;;  %357 = vst.msk [vmem:[#allocation2 + $0x38] sm:$0xff] %vm2649_vm2, %v1534_v1 }
  0x2a   :  { %1364 = vmatmul.mubr.bf16.gmra.mrb[4].mxu0 %v1297_v54  ;;  %1372 = vmatmul.mubr.bf16.gmra.mrb[4].mxu1 %v1301_v55  ;;  %358 = vst.msk [vmem:[#allocation2 + $0x40] sm:$0xff] %vm2649_vm2, %v1534_v1  ;;  %359 = vst.msk [vmem:[#allocation2 + $0x48] sm:$0xff] %vm2649_vm2, %v1534_v1 }
  0x2b   :  { %360 = vst.msk [vmem:[#allocation2 + $0x50] sm:$0xff] %vm2649_vm2, %v1534_v1  ;;  %361 = vst.msk [vmem:[#allocation2 + $0x58] sm:$0xff] %vm2649_vm2, %v1534_v1 }
  0x2c   :  { %362 = vst.msk [vmem:[#allocation2 + $0x60] sm:$0xff] %vm2649_vm2, %v1534_v1  ;;  %363 = vst.msk [vmem:[#allocation2 + $0x68] sm:$0xff] %vm2649_vm2, %v1534_v1 }
  0x2d   :  { %364 = vst.msk [vmem:[#allocation2 + $0x70] sm:$0xff] %vm2649_vm2, %v1534_v1  ;;  %365 = vst.msk [vmem:[#allocation2 + $0x78] sm:$0xff] %vm2649_vm2, %v1534_v1  ;;  %v1927_v52 = vld [vmem:[#allocation2 + $0x10] sm:$0xff]  ;;  %v1929_v53 = vld [vmem:[#allocation2] sm:$0xff] }
  0x2e   :  { %2651 = vst [vmem:[#allocation6_spill] sm:$0xff] %v1929_v53  ;;  %v1944_v1 = vld [vmem:[#allocation2 + $0x18] sm:$0xff] }
  0x2f   :  { %2653 = vst [vmem:[#allocation8_spill] sm:$0xff] %v1944_v1 }
  0x84   :  { %v285_v2 = vpop.permute.xlu1 %284 }
  0x85   :  { %vm331_vm3 = vcmp.eq.s32.totalorder %v285_v2, %v1663_v60 }
  0x86   :  { %v1313_v7 = vsel %vm331_vm3, 1.0, %v2619_v62 }
  0x87   :  { %v1808_v10 = vsel %vm456_vm5, %v1313_v7, 0.0 }
  0x89   :  { %v279_v61 = vpop.permute.xlu0 %278  ;;  %v288_v4 = vpop.permute.xlu1 %287 }
  0x8a   :  { %vm329_vm1 = vcmp.eq.s32.totalorder %v279_v61, %v1663_v60  ;;  %vm332_vm4 = vcmp.eq.s32.totalorder %v288_v4, %v1663_v60  ;;  %v1937_v61 = vld [vmem:[#allocation2 + $0x50] sm:$0xff] }
  0x8b   :  { %v1311_v63 = vsel %vm329_vm1, 1.0, %v2619_v62  ;;  %v1314_v9 = vsel %vm332_vm4, 1.0, %v2619_v62 }
  0x8c   :  { %v1672_v0 = vsel %vm454_vm0, %v1311_v63, 0.0  ;;  %v1820_v15 = vsel %vm457_vm7, %v1314_v9, 0.0 }
  0x8d   :  { %999 = vadd.xlane.f32.xlu1 %v1672_v0  ;;  %v282_v6 = vpop.permute.xlu0 %281  ;;  %v294_v11 = vpop.permute.xlu1 %293 }
  0x8e   :  { %vm330_vm6 = vcmp.eq.s32.totalorder %v282_v6, %v1663_v60  ;;  %vm334_vm9 = vcmp.eq.s32.totalorder %v294_v11, %v1663_v60  ;;  %v1956_v11 = vld [vmem:[#allocation2 + $0x40] sm:$0xff] }
  0x8f   :  { %v1312_v14 = vsel %vm330_vm6, 1.0, %v2619_v62  ;;  %v1316_v27 = vsel %vm334_vm9, 1.0, %v2619_v62  ;;  %2655 = vst [vmem:[#allocation10_spill] sm:$0xff] %v1956_v11 }
  0x90   :  { %v503_v24 = vsel %vm455_vm8, %v1312_v14, 0.0  ;;  %v1871_v32 = vsel %vm459_vm10, %v1316_v27, 0.0  ;;  %v2036_v14 = vld [vmem:[#allocation2 + $0x20] sm:$0xff] }
  0x91   :  { %v1896_v38 = vpop.permute.xlu1 %299  ;;  %2671 = vst [vmem:[#allocation26_spill] sm:$0xff] %v2036_v14 }
  0x95   :  { %v1898_v39 = vpop.permute.xlu1 %305 }
  0x99   :  { %v1900_v40 = vpop.permute.xlu1 %314 }
  0xf5   :  { %v1810_v12 = vpop.f32.mrb[0].mxu0  ;;  %v1812_v13 = vpop.f32.mrb[0].mxu1 }
  0xf6   :  { %v1822_v16 = vpop.f32.mrb[1].mxu0  ;;  %538 = vmax.xlane.f32.xlu0 %v1810_v12  ;;  %v1825_v17 = vpop.f32.mrb[1].mxu1  ;;  %v1829_v18 = vmul.f32 %v1810_v12, %v1808_v10 }
  0xf7   :  { %v1831_v19 = vpop.f32.mrb[2].mxu0  ;;  %534 = vmax.xlane.f32.xlu1 %v1822_v16  ;;  %v1834_v20 = vpop.f32.mrb[2].mxu1 }
  0xf8   :  { %v1840_v22 = vpop.f32.mrb[3].mxu0  ;;  %v1842_v23 = vpop.f32.mrb[3].mxu1  ;;  %v1849_v25 = vmul.f32 %v1831_v19, %v1820_v15 }
  0xf9   :  { %v1852_v26 = vmul.f32 %v503_v24, %v1840_v22 }
  0xfa   :  { %554 = vmax.xlane.f32.xlu0 %v1812_v13 }
  0xfb   :  { %540 = vmax.xlane.f32.xlu1 %v1831_v19 }
  0xfd   :  { %v1859_v28 = vpop.f32.mrb[4].mxu0  ;;  %v1861_v29 = vpop.f32.mrb[4].mxu1 }
  0xfe   :  { %550 = vmax.xlane.f32.xlu0 %v1825_v17  ;;  %v1864_v30 = vpop.f32.mrb[5].mxu0  ;;  %v1866_v31 = vpop.f32.mrb[5].mxu1 }
  0xff   :  { %556 = vmax.xlane.f32.xlu1 %v1834_v20  ;;  %v1874_v33 = vpop.f32.mrb[6].mxu0  ;;  %v1876_v34 = vpop.f32.mrb[6].mxu1 }
 0x100   :  { %v1878_v35 = vpop.f32.mrb[7].mxu0  ;;  %v1880_v36 = vpop.f32.mrb[7].mxu1 }
 0x101   :  { %v1884_v37 = vmul.f32 %v1871_v32, %v1878_v35 }
 0x102   :  { %536 = vmax.xlane.f32.xlu0 %v1840_v22 }
 0x103   :  { %552 = vmax.xlane.f32.xlu1 %v1842_v23 }
 0x106   :  { %546 = vmax.xlane.f32.xlu0 %v1859_v28 }
 0x107   :  { %548 = vmax.xlane.f32.xlu1 %v1874_v33 }
 0x10a   :  { %562 = vmax.xlane.f32.xlu0 %v1861_v29 }
 0x10b   :  { %564 = vmax.xlane.f32.xlu1 %v1876_v34 }
 0x10e   :  { %542 = vmax.xlane.f32.xlu0 %v1864_v30 }
 0x10f   :  { %544 = vmax.xlane.f32.xlu1 %v1878_v35 }
 0x112   :  { %558 = vmax.xlane.f32.xlu0 %v1866_v31 }
 0x113   :  { %560 = vmax.xlane.f32.xlu1 %v1880_v36 }
 0x116   :  { %1001 = vadd.xlane.f32.xlu0 %v503_v24  ;;  %v1963_v24 = vld [vmem:[#allocation2 + $0x58] sm:$0xff] }
 0x117   :  { %2656 = vst [vmem:[#allocation11_spill] sm:$0xff] %v1963_v24 }
 0x11a   :  { %v1000_v44 = vpop.xlane.xlu1 %999 }
 0x11b   :  { %v1031_v45 = vadd.f32 %v1000_v44, %v983_v42 }
 0x11d   :  { %1047 = vst.msk [vmem:[#allocation5] sm:$0xff] %vm2649_vm2, %v1031_v45  ;;  %v1976_v45 = vld [vmem:[#allocation2 + $0x8] sm:$0xff] }
 0x11e   :  { %2659 = vst [vmem:[#allocation14_spill] sm:$0xff] %v1976_v45 }
 0x124   :  { %317 = vperm.xlu1 %1395, %v273_v41  }
 0x128   :  { %323 = vperm.xlu1 %1395, %v275_v43  }
 0x12c   :  { %290 = vperm.xlu0 %1394, %v264_v46  }
 0x130   :  { %296 = vperm.xlu0 %1394, %v266_v47   ;;  %v1983_v47 = vld [vmem:[#allocation2 + $0x48] sm:$0xff] }
 0x131   :  { %2660 = vst [vmem:[#allocation15_spill] sm:$0xff] %v1983_v47 }
 0x134   :  { %302 = vperm.xlu0 %1394, %v268_v48   ;;  %v2016_v48 = vld [vmem:[#allocation2 + $0x70] sm:$0xff] }
 0x135   :  { %2667 = vst [vmem:[#allocation22_spill] sm:$0xff] %v2016_v48 }
 0x138   :  { %308 = vperm.xlu0 %1394, %v270_v49  }
 0x13c   :  { %311 = vperm.xlu0 %1394, %v271_v50  }
 0x140   :  { %320 = vperm.xlu0 %1394, %v274_v51  }
 0x183   :  { %v539_v54 = vpop.xlane.xlu0 %538 }
 0x184   :  { %v1932_v55 = vmax.f32 %v1927_v52, %v539_v54  ;;  %v535_v56 = vpop.xlane.xlu1 %534 }
 0x185   :  { %v1935_v57 = vmax.f32 %v1929_v53, %v535_v56  ;;  %v1996_v56 = vld [vmem:[#allocation2 + $0x30] sm:$0xff] }
 0x186   :  { %873 = vst.msk [vmem:[#allocation2 + $0x10] sm:$0xff] %vm2649_vm2, %v1932_v55  ;;  %594 = vperm.xlu0 %1394, %v1932_v55   ;;  %2663 = vst [vmem:[#allocation18_spill] sm:$0xff] %v1996_v56 }
 0x187   :  { %2652 = vst [vmem:[#allocation7_spill] sm:$0xff] %v1935_v57  ;;  %871 = vst.msk [vmem:[#allocation2] sm:$0xff] %vm2649_vm2, %v1935_v57  ;;  %v555_v4 = vpop.xlane.xlu0 %554 }
 0x188   :  { %v1951_v6 = vmax.f32 %v1937_v61, %v555_v4  ;;  %v541_v7 = vpop.xlane.xlu1 %540 }
 0x189   :  { %v1954_v9 = vmax.f32 %v1944_v1, %v541_v7  ;;  %v2003_v7 = vld [vmem:[#allocation2 + $0x38] sm:$0xff] }
 0x18a   :  { %881 = vst.msk [vmem:[#allocation2 + $0x50] sm:$0xff] %vm2649_vm2, %v1951_v6  ;;  %634 = vperm.xlu0 %1394, %v1951_v6   ;;  %2664 = vst [vmem:[#allocation19_spill] sm:$0xff] %v2003_v7 }
 0x18b   :  { %2654 = vst [vmem:[#allocation9_spill] sm:$0xff] %v1954_v9  ;;  %874 = vst.msk [vmem:[#allocation2 + $0x18] sm:$0xff] %vm2649_vm2, %v1954_v9  ;;  %599 = vperm.xlu1 %1395, %v1954_v9   ;;  %v551_v41 = vpop.xlane.xlu0 %550 }
 0x18c   :  { %v1971_v42 = vmax.f32 %v1956_v11, %v551_v41  ;;  %v557_v43 = vpop.xlane.xlu1 %556  ;;  %v2023_v41 = vld [vmem:[#allocation2 + $0x78] sm:$0xff] }
 0x18d   :  { %v1974_v44 = vmax.f32 %v1963_v24, %v557_v43  ;;  %2668 = vst [vmem:[#allocation23_spill] sm:$0xff] %v2023_v41 }
 0x18e   :  { %2657 = vst [vmem:[#allocation12_spill] sm:$0xff] %v1971_v42  ;;  %879 = vst.msk [vmem:[#allocation2 + $0x40] sm:$0xff] %vm2649_vm2, %v1971_v42  ;;  %584 = vperm.xlu0 %1394, %v1935_v57   ;;  %v2180_v57 = vadd.s32 56, %v1656_v58 }
 0x18f   :  { %2658 = vst [vmem:[#allocation13_spill] sm:$0xff] %v1974_v44  ;;  %882 = vst.msk [vmem:[#allocation2 + $0x58] sm:$0xff] %vm2649_vm2, %v1974_v44  ;;  %639 = vperm.xlu1 %1395, %v1974_v44   ;;  %v537_v49 = vpop.xlane.xlu0 %536 }
 0x190   :  { %v1991_v50 = vmax.f32 %v1976_v45, %v537_v49  ;;  %v553_v51 = vpop.xlane.xlu1 %552 }
 0x191   :  { %v1994_v54 = vmax.f32 %v1983_v47, %v553_v51 }
 0x192   :  { %2661 = vst [vmem:[#allocation16_spill] sm:$0xff] %v1991_v50  ;;  %872 = vst.msk [vmem:[#allocation2 + $0x8] sm:$0xff] %vm2649_vm2, %v1991_v50  ;;  %624 = vperm.xlu0 %1394, %v1971_v42  }
 0x193   :  { %2662 = vst [vmem:[#allocation17_spill] sm:$0xff] %v1994_v54  ;;  %880 = vst.msk [vmem:[#allocation2 + $0x48] sm:$0xff] %vm2649_vm2, %v1994_v54  ;;  %589 = vperm.xlu1 %1395, %v1991_v50   ;;  %v547_v43 = vpop.xlane.xlu0 %546 }
 0x194   :  { %v2011_v49 = vmax.f32 %v1996_v56, %v547_v43  ;;  %v549_v51 = vpop.xlane.xlu1 %548  ;;  %v2043_v43 = vld [vmem:[#allocation2 + $0x28] sm:$0xff] }
 0x195   :  { %v2014_v4 = vmax.f32 %v2003_v7, %v549_v51  ;;  %2672 = vst [vmem:[#allocation27_spill] sm:$0xff] %v2043_v43  ;;  %v2056_v7 = vld [vmem:[#allocation2 + $0x60] sm:$0xff] }
 0x196   :  { %2665 = vst [vmem:[#allocation20_spill] sm:$0xff] %v2011_v49  ;;  %877 = vst.msk [vmem:[#allocation2 + $0x30] sm:$0xff] %vm2649_vm2, %v2011_v49  ;;  %614 = vperm.xlu0 %1394, %v2011_v49  }
 0x197   :  { %2666 = vst [vmem:[#allocation21_spill] sm:$0xff] %v2014_v4  ;;  %878 = vst.msk [vmem:[#allocation2 + $0x38] sm:$0xff] %vm2649_vm2, %v2014_v4  ;;  %629 = vperm.xlu1 %1395, %v1994_v54   ;;  %v563_v51 = vpop.xlane.xlu0 %562  ;;  %v2136_v54 = vadd.s32 80, %v1656_v58 }
 0x198   :  { %v2031_v27 = vmax.f32 %v2016_v48, %v563_v51  ;;  %v565_v46 = vpop.xlane.xlu1 %564  ;;  %2675 = vst [vmem:[#allocation30_spill] sm:$0xff] %v2056_v7  ;;  %v2063_v51 = vld [vmem:[#allocation2 + $0x68] sm:$0xff] }
 0x199   :  { %v2034_v2 = vmax.f32 %v2023_v41, %v565_v46  ;;  %2676 = vst [vmem:[#allocation31_spill] sm:$0xff] %v2063_v51  ;;  %vm464_vm6 = vcmp.ne.s32.totalorder %v2136_v54, %v1658_v59 }
 0x19a   :  { %2669 = vst [vmem:[#allocation24_spill] sm:$0xff] %v2031_v27  ;;  %885 = vst.msk [vmem:[#allocation2 + $0x70] sm:$0xff] %vm2649_vm2, %v2031_v27  ;;  %654 = vperm.xlu0 %1394, %v2031_v27  }
 0x19b   :  { %2670 = vst [vmem:[#allocation25_spill] sm:$0xff] %v2034_v2  ;;  %886 = vst.msk [vmem:[#allocation2 + $0x78] sm:$0xff] %vm2649_vm2, %v2034_v2  ;;  %619 = vperm.xlu1 %1395, %v2014_v4   ;;  %v543_v46 = vpop.xlane.xlu0 %542  ;;  %v984_v4 = vld [vmem:[#allocation5 + $0x8] sm:$0xff] }
 0x19c   :  { %v2051_v62 = vmax.f32 %v2036_v14, %v543_v46  ;;  %v545_v63 = vpop.xlane.xlu1 %544  ;;  %v2074_v14 = vadd.s32 104, %v1656_v58  ;;  %v2092_v46 = vadd.s32 120, %v1656_v58 }
 0x19d   :  { %v2054_v48 = vmax.f32 %v2043_v43, %v545_v63 }
 0x19e   :  { %2673 = vst [vmem:[#allocation28_spill] sm:$0xff] %v2051_v62  ;;  %875 = vst.msk [vmem:[#allocation2 + $0x20] sm:$0xff] %vm2649_vm2, %v2051_v62  ;;  %604 = vperm.xlu0 %1394, %v2051_v62   ;;  %vm2650_vm11 = vcmp.ne.s32.totalorder %v2074_v14, %v1658_v59  ;;  %vm469_vm13 = vcmp.ne.s32.totalorder %v2092_v46, %v1658_v59 }
 0x19f   :  { %2674 = vst [vmem:[#allocation29_spill] sm:$0xff] %v2054_v48  ;;  %876 = vst.msk [vmem:[#allocation2 + $0x28] sm:$0xff] %vm2649_vm2, %v2054_v48  ;;  %659 = vperm.xlu1 %1395, %v2034_v2   ;;  %v559_v63 = vpop.xlane.xlu0 %558 }
 0x1a0   :  { %v2071_v41 = vmax.f32 %v2056_v7, %v559_v63  ;;  %v561_v27 = vpop.xlane.xlu1 %560 }
 0x1a1   :  { %v2077_v62 = vmax.f32 %v2063_v51, %v561_v27 }
 0x1a2   :  { %2677 = vst [vmem:[#allocation32_spill] sm:$0xff] %v2071_v41  ;;  %883 = vst.msk [vmem:[#allocation2 + $0x60] sm:$0xff] %vm2649_vm2, %v2071_v41  ;;  %644 = vperm.xlu0 %1394, %v2071_v41   ;;  %v2679_v41 = vmov 0.0  }
 0x1a3   :  { %2678 = vst [vmem:[#allocation33_spill] sm:$0xff] %v2077_v62  ;;  %884 = vst.msk [vmem:[#allocation2 + $0x68] sm:$0xff] %vm2649_vm2, %v2077_v62  ;;  %609 = vperm.xlu1 %1395, %v2054_v48   ;;  %v1002_v43 = vpop.xlane.xlu0 %1001 }
 0x1a4   :  { %v1032_v27 = vadd.f32 %v1002_v43, %v984_v4  ;;  %v318_v2 = vpop.permute.xlu1 %317 }
 0x1a5   :  { %vm342_vm12 = vcmp.eq.s32.totalorder %v318_v2, %v1663_v60 }
 0x1a6   :  { %1048 = vst.msk [vmem:[#allocation5 + $0x8] sm:$0xff] %vm2649_vm2, %v1032_v27  ;;  %v1324_v63 = vsel %vm342_vm12, 1.0, %v2679_v41 }
 0x1a7   :  { %649 = vperm.xlu1 %1395, %v2077_v62   ;;  %v2101_v51 = vsel %vm2650_vm11, %v1324_v63, 0.0  ;;  %v2112_v62 = vadd.s32 48, %v1656_v58 }
 0x1a8   :  { %v324_v4 = vpop.permute.xlu1 %323  ;;  %v2107_v43 = vmul.f32 %v2101_v51, %v1880_v36 }
 0x1a9   :  { %vm344_vm14 = vcmp.eq.s32.totalorder %v324_v4, %v1663_v60  ;;  %vm460_vm15 = vcmp.ne.s32.totalorder %v2112_v62, %v1658_v59  ;;  %v2126_v4 = vadd.s32 64, %v1656_v58 }
 0x1aa   :  { %v1326_v2 = vsel %vm344_vm14, 1.0, %v2679_v41 }
 0x1ab   :  { %v291_v27 = vpop.permute.xlu0 %290  ;;  %v2117_v63 = vsel %vm469_vm13, %v1326_v2, 0.0  ;;  %vm462_vm3 = vcmp.ne.s32.totalorder %v2126_v4, %v1658_v59 }
 0x1ac   :  { %v2121_v7 = vmul.f32 %v1876_v34, %v2117_v63  ;;  %vm333_vm2 = vcmp.eq.s32.totalorder %v291_v27, %v1663_v60 }
 0x1af   :  { %v297_v48 = vpop.permute.xlu0 %296 }
 0x1b0   :  { %vm335_vm1 = vcmp.eq.s32.totalorder %v297_v48, %v1663_v60 }
 0x1b1   :  { %v1317_v49 = vsel %vm335_vm1, 1.0, %v2679_v41 }
 0x1b2   :  { %v508_v2 = vsel %vm460_vm15, %v1317_v49, 0.0  ;;  %v2147_v49 = vadd.s32 88, %v1656_v58 }
 0x1b3   :  { %v303_v56 = vpop.permute.xlu0 %302  ;;  %v2139_v47 = vmul.f32 %v1859_v28, %v508_v2 }
 0x1b4   :  { %vm337_vm4 = vcmp.eq.s32.totalorder %v303_v56, %v1663_v60  ;;  %vm465_vm12 = vcmp.ne.s32.totalorder %v2147_v49, %v1658_v59 }
 0x1b5   :  { %v1319_v48 = vsel %vm337_vm4, 1.0, %v2679_v41 }
 0x1b6   :  { %v510_v50 = vsel %vm462_vm3, %v1319_v48, 0.0  ;;  %v2162_v48 = vadd.s32 112, %v1656_v58 }
 0x1b7   :  { %v309_v45 = vpop.permute.xlu0 %308  ;;  %v2152_v44 = vmul.f32 %v510_v50, %v1825_v17 }
 0x1b8   :  { %vm339_vm9 = vcmp.eq.s32.totalorder %v309_v45, %v1663_v60  ;;  %vm468_vm1 = vcmp.ne.s32.totalorder %v2162_v48, %v1658_v59 }
 0x1b9   :  { %v1321_v56 = vsel %vm339_vm9, 1.0, %v2679_v41  ;;  %vm336_vm9 = vcmp.eq.s32.totalorder %v1896_v38, %v1663_v60  ;;  %v2201_v38 = vadd.s32 32, %v1656_v58 }
 0x1ba   :  { %v512_v24 = vsel %vm464_vm6, %v1321_v56, 0.0 }
 0x1bb   :  { %v312_v42 = vpop.permute.xlu0 %311  ;;  %v2165_v11 = vmul.f32 %v1812_v13, %v512_v24  ;;  %vm458_vm11 = vcmp.ne.s32.totalorder %v2201_v38, %v1658_v59 }
 0x1bc   :  { %vm340_vm14 = vcmp.eq.s32.totalorder %v312_v42, %v1663_v60 }
 0x1bd   :  { %v1322_v45 = vsel %vm340_vm14, 1.0, %v2679_v41  ;;  %vm461_vm14 = vcmp.ne.s32.totalorder %v2180_v57, %v1658_v59 }
 0x1be   :  { %v513_v9 = vsel %vm465_vm12, %v1322_v45, 0.0 }
 0x1bf   :  { %v321_v1 = vpop.permute.xlu0 %320  ;;  %v2175_v56 = vmul.f32 %v1834_v20, %v513_v9 }
 0x1c0   :  { %vm343_vm4 = vcmp.eq.s32.totalorder %v321_v1, %v1663_v60  ;;  %v2196_v1 = vadd.s32 72, %v1656_v58 }
 0x1c1   :  { %1005 = vadd.xlane.f32.xlu0 %v1820_v15  ;;  %v1325_v42 = vsel %vm343_vm4, 1.0, %v2679_v41  ;;  %v1318_v15 = vsel %vm336_vm9, 1.0, %v2679_v41  ;;  %vm338_vm4 = vcmp.eq.s32.totalorder %v1898_v39, %v1663_v60  ;;  %v1315_v39 = vsel %vm333_vm2, 1.0, %v2679_v41 }
 0x1c2   :  { %v516_v45 = vsel %vm468_vm1, %v1325_v42, 0.0  ;;  %vm463_vm9 = vcmp.ne.s32.totalorder %v2196_v1, %v1658_v59  ;;  %v1320_v42 = vsel %vm338_vm4, 1.0, %v2679_v41  ;;  %vm341_vm2 = vcmp.eq.s32.totalorder %v1900_v40, %v1663_v60 }
 0x1c3   :  { %v2189_v53 = vmul.f32 %v1861_v29, %v516_v45  ;;  %v2220_v27 = vsel %vm463_vm9, %v1320_v42, 0.0  ;;  %v1323_v42 = vsel %vm341_vm2, 1.0, %v2679_v41  ;;  %v903_v60 = vmul.f32 %v1672_v0, %v1822_v16 }
 0x1c4   :  { %v912_v21 = vmul.f32 %v2220_v27, %v1842_v23 }
 0x1c5   :  { %1009 = vadd.xlane.f32.xlu0 %v1871_v32  ;;  %v2207_v32 = vsel %vm461_vm14, %v1318_v15, 0.0  ;;  %v506_v15 = vsel %vm458_vm11, %v1315_v39, 0.0 }
 0x1c6   :  { %v910_v38 = vmul.f32 %v1874_v33, %v2207_v32 }
 0x1c9   :  { %1013 = vadd.xlane.f32.xlu0 %v2207_v32 }
 0x1cb   :  { %1003 = vadd.xlane.f32.xlu1 %v1808_v10  ;;  %v2228_v10 = vadd.s32 96, %v1656_v58 }
 0x1cd   :  { %1017 = vadd.xlane.f32.xlu0 %v2220_v27  ;;  %vm466_vm4 = vcmp.ne.s32.totalorder %v2228_v10, %v1658_v59 }
 0x1cf   :  { %1007 = vadd.xlane.f32.xlu1 %v506_v15 }
 0x1d1   :  { %1021 = vadd.xlane.f32.xlu0 %v513_v9  ;;  %v2240_v9 = vsel %vm466_vm4, %v1323_v42, 0.0 }
 0x1d2   :  { %v915_v10 = vmul.f32 %v2240_v9, %v1866_v31 }
 0x1d3   :  { %1011 = vadd.xlane.f32.xlu1 %v508_v2 }
 0x1d5   :  { %1025 = vadd.xlane.f32.xlu0 %v2101_v51 }
 0x1d7   :  { %1015 = vadd.xlane.f32.xlu1 %v510_v50 }
 0x1d9   :  { %1029 = vadd.xlane.f32.xlu0 %v2117_v63 }
 0x1db   :  { %1019 = vadd.xlane.f32.xlu1 %v512_v24 }
 0x1dd   :  { %921 = vadd.xlane.f32.xlu0 %v1852_v26  ;;  %v907_v26 = vmul.f32 %v506_v15, %v1864_v30 }
 0x1df   :  { %1023 = vadd.xlane.f32.xlu1 %v2240_v9 }
 0x1e1   :  { %925 = vadd.xlane.f32.xlu0 %v1849_v25 }
 0x1e3   :  { %1027 = vadd.xlane.f32.xlu1 %v516_v45 }
 0x1e5   :  { %929 = vadd.xlane.f32.xlu0 %v1884_v37 }
 0x1e7   :  { %919 = vadd.xlane.f32.xlu1 %v903_v60 }
 0x1eb   :  { %923 = vadd.xlane.f32.xlu1 %v1829_v18 }
 0x1ef   :  { %927 = vadd.xlane.f32.xlu1 %v907_v26 }
 0x205   :  { %v595_v40 = vpop.permute.xlu0 %594 }
 0x206   :  { %v664_v24 = vsub.f32 %v1810_v12, %v595_v40 }
 0x208   :  { %v682_v50 = vmul.f32 1.442695, %v664_v24 }
 0x209   :  { %v635_v41 = vpop.permute.xlu0 %634 }
 0x20a   :  { %1404 = vpow2.f32 %v682_v50  ;;  %v672_v25 = vsub.f32 %v1812_v13, %v635_v41  ;;  %v600_v51 = vpop.permute.xlu1 %599 }
 0x20b   :  { %v665_v37 = vsub.f32 %v1831_v19, %v600_v51 }
 0x20c   :  { %v698_v63 = vmul.f32 1.442695, %v672_v25 }
 0x20d   :  { %v585_v2 = vpop.permute.xlu0 %584  ;;  %v684_v39 = vmul.f32 1.442695, %v665_v37 }
 0x20e   :  { %1406 = vpow2.f32 %v698_v63  ;;  %v662_v0 = vsub.f32 %v1822_v16, %v585_v2  ;;  %v640_v18 = vpop.permute.xlu1 %639 }
 0x20f   :  { %v673_v45 = vsub.f32 %v1834_v20, %v640_v18 }
 0x210   :  { %v678_v15 = vmul.f32 1.442695, %v662_v0 }
 0x211   :  { %v625_v42 = vpop.permute.xlu0 %624  ;;  %v700_v26 = vmul.f32 1.442695, %v673_v45 }
 0x212   :  { %1408 = vpow2.f32 %v678_v15  ;;  %v670_v12 = vsub.f32 %v1825_v17, %v625_v42  ;;  %v590_v60 = vpop.permute.xlu1 %589 }
 0x213   :  { %v663_v13 = vsub.f32 %v1840_v22, %v590_v60  ;;  %1410 = vpow2.f32 %v684_v39 }
 0x214   :  { %v1405_v40 = vpop.eup %1404  ;;  %v694_v19 = vmul.f32 1.442695, %v670_v12 }
 0x215   :  { %v680_v24 = vmul.f32 1.442695, %v663_v13  ;;  %v615_v50 = vpop.permute.xlu0 %614  ;;  %v712_v16 = vsel %vm456_vm5, %v1405_v40, 0.0  ;;  %vm2681_vm5 = vcmask 7168  }
 0x216   :  { %1412 = vpow2.f32 %v694_v19  ;;  %v668_v20 = vsub.f32 %v1859_v28, %v615_v50  ;;  %v630_v41 = vpop.permute.xlu1 %629  ;;  %810 = vadd.xlane.f32.xlu0 %v712_v16 }
 0x217   :  { %1414 = vpow2.f32 %v700_v26  ;;  %v671_v17 = vsub.f32 %v1842_v23, %v630_v41 }
 0x218   :  { %v1407_v25 = vpop.eup %1406  ;;  %1416 = vpow2.f32 %v680_v24  ;;  %v690_v22 = vmul.f32 1.442695, %v668_v20 }
 0x219   :  { %v696_v51 = vmul.f32 1.442695, %v671_v17  ;;  %v655_v63 = vpop.permute.xlu0 %654  ;;  %v720_v37 = vsel %vm464_vm6, %v1407_v25, 0.0 }
 0x21a   :  { %v676_v3 = vsub.f32 %v1861_v29, %v655_v63  ;;  %v620_v2 = vpop.permute.xlu1 %619  ;;  %826 = vadd.xlane.f32.xlu1 %v720_v37  ;;  %1418 = vpow2.f32 %v690_v22 }
 0x21b   :  { %v669_v28 = vsub.f32 %v1874_v33, %v620_v2  ;;  %1420 = vpow2.f32 %v696_v51 }
 0x21c   :  { %v1409_v0 = vpop.eup %1408  ;;  %v706_v18 = vmul.f32 1.442695, %v676_v3 }
 0x21d   :  { %v692_v45 = vmul.f32 1.442695, %v669_v28  ;;  %v605_v39 = vpop.permute.xlu0 %604  ;;  %v710_v15 = vsel %vm454_vm0, %v1409_v0, 0.0  ;;  %v1411_v42 = vpop.eup %1410  ;;  %vm2680_vm0 = vcmp.ne.s32.totalorder %v2074_v14, %v1658_v59  ;;  %v986_v59 = vld [vmem:[#allocation5 + $0x18] sm:$0xff] }
 0x21e   :  { %v666_v54 = vsub.f32 %v1864_v30, %v605_v39  ;;  %v660_v12 = vpop.permute.xlu1 %659  ;;  %806 = vadd.xlane.f32.xlu0 %v710_v15  ;;  %1422 = vpow2.f32 %v706_v18  ;;  %v713_v24 = vsel %vm457_vm7, %v1411_v42, 0.0  ;;  %vm2682_vm7 = vmmov %vm2681_vm5  ;;  %v994_v42 = vld [vmem:[#allocation5 + $0x58] sm:$0xff] }
 0x21f   :  { %v677_v29 = vsub.f32 %v1876_v34, %v660_v12  ;;  %1424 = vpow2.f32 %v692_v45 }
 0x220   :  { %v1413_v60 = vpop.eup %1412  ;;  %v686_v26 = vmul.f32 1.442695, %v666_v54 }
 0x221   :  { %v1415_v13 = vpop.eup %1414  ;;  %v708_v40 = vmul.f32 1.442695, %v677_v29  ;;  %v645_v19 = vpop.permute.xlu0 %644  ;;  %v718_v58 = vsel %vm462_vm3, %v1413_v60, 0.0  ;;  %v989_v29 = vld [vmem:[#allocation5 + $0x30] sm:$0xff]  ;;  %vm2688_vm3 = vmmov %vm2681_vm5 }
 0x222   :  { %v1417_v30 = vpop.eup %1416  ;;  %v674_v50 = vsub.f32 %v1866_v31, %v645_v19  ;;  %v610_v16 = vpop.permute.xlu1 %609  ;;  %812 = vadd.xlane.f32.xlu0 %v713_v24  ;;  %822 = vadd.xlane.f32.xlu1 %v718_v58  ;;  %1426 = vpow2.f32 %v686_v26  ;;  %v721_v5 = vsel %vm465_vm12, %v1415_v13, 0.0  ;;  %v996_v13 = vld [vmem:[#allocation5 + $0x68] sm:$0xff]  ;;  %v991_v24 = vld [vmem:[#allocation5 + $0x40] sm:$0xff]  ;;  %vm2689_vm6 = vmmov %vm2688_vm3 }
 0x223   :  { %v667_v34 = vsub.f32 %v1878_v35, %v610_v16  ;;  %1428 = vpow2.f32 %v708_v40  ;;  %v711_v4 = vsel %vm455_vm8, %v1417_v30, 0.0  ;;  %vm2683_vm8 = vmmov %vm2681_vm5 }
 0x224   :  { %v702_v20 = vmul.f32 1.442695, %v674_v50  ;;  %v1419_v41 = vpop.eup %1418  ;;  %v998_v50 = vld [vmem:[#allocation5 + $0x78] sm:$0xff]  ;;  %vm2690_vm12 = vmmov %vm2688_vm3 }
 0x225   :  { %v688_v17 = vmul.f32 1.442695, %v667_v34  ;;  %v1421_v25 = vpop.eup %1420  ;;  %v716_v49 = vsel %vm460_vm15, %v1419_v41, 0.0  ;;  %vm2687_vm15 = vmmov %vm2681_vm5 }
 0x226   :  { %v650_v22 = vpop.permute.xlu1 %649  ;;  %828 = vadd.xlane.f32.xlu0 %v721_v5  ;;  %808 = vadd.xlane.f32.xlu1 %v711_v4  ;;  %1430 = vpow2.f32 %v702_v20  ;;  %v719_v37 = vsel %vm463_vm9, %v1421_v25, 0.0  ;;  %v993_v20 = vld [vmem:[#allocation5 + $0x50] sm:$0xff]  ;;  %v888_v5 = vld [vmem:[#allocation4 + $0x8] sm:$0xff] }
 0x227   :  { %v675_v51 = vsub.f32 %v1880_v36, %v650_v22  ;;  %1432 = vpow2.f32 %v688_v17  ;;  %v995_v22 = vld [vmem:[#allocation5 + $0x60] sm:$0xff] }
 0x228   :  { %v1423_v35 = vpop.eup %1422 }
 0x229   :  { %v704_v63 = vmul.f32 1.442695, %v675_v51  ;;  %v1425_v8 = vpop.eup %1424  ;;  %v724_v2 = vsel %vm468_vm1, %v1423_v35, 0.0  ;;  %vm2691_vm1 = vmmov %vm2688_vm3 }
 0x22a   :  { %824 = vadd.xlane.f32.xlu0 %v719_v37  ;;  %818 = vadd.xlane.f32.xlu1 %v716_v49  ;;  %v717_v36 = vsel %vm461_vm14, %v1425_v8, 0.0  ;;  %vm2692_vm14 = vmmov %vm2691_vm1  ;;  %v997_v8 = vld [vmem:[#allocation5 + $0x70] sm:$0xff] }
 0x22b   :  { %1434 = vpow2.f32 %v704_v63  ;;  %v890_v63 = vld [vmem:[#allocation4 + $0x18] sm:$0xff]  ;;  %vm2693_vm9 = vmmov %vm2691_vm1 }
 0x22c   :  { %v1427_v3 = vpop.eup %1426  ;;  %vm2694_vm2 = vmmov %vm2691_vm1 }
 0x22d   :  { %v1429_v28 = vpop.eup %1428  ;;  %v714_v0 = vsel %vm458_vm11, %v1427_v3, 0.0  ;;  %vm2685_vm11 = vmmov %vm2681_vm5 }
 0x22e   :  { %820 = vadd.xlane.f32.xlu0 %v717_v36  ;;  %834 = vadd.xlane.f32.xlu1 %v724_v2  ;;  %v725_v62 = vsel %vm469_vm13, %v1429_v28, 0.0  ;;  %vm2686_vm13 = vmmov %vm2681_vm5  ;;  %v892_v2 = vld [vmem:[#allocation4 + $0x28] sm:$0xff] }
 0x230   :  { %v1431_v1 = vpop.eup %1430 }
 0x231   :  { %v1433_v18 = vpop.eup %1432  ;;  %v722_v48 = vsel %vm466_vm4, %v1431_v1, 0.0  ;;  %vm2695_vm4 = vmmov %vm2691_vm1 }
 0x232   :  { %836 = vadd.xlane.f32.xlu0 %v725_v62  ;;  %814 = vadd.xlane.f32.xlu1 %v714_v0  ;;  %v715_v57 = vsel %vm459_vm10, %v1433_v18, 0.0  ;;  %vm2684_vm10 = vmmov %vm2681_vm5  ;;  %v887_v62 = vld [vmem:[#allocation4] sm:$0xff] }
 0x235   :  { %v1435_v45 = vpop.eup %1434 }
 0x236   :  { %816 = vadd.xlane.f32.xlu0 %v715_v57  ;;  %830 = vadd.xlane.f32.xlu1 %v722_v48  ;;  %v723_v46 = vsel %vm2680_vm0, %v1435_v45, 0.0  ;;  %vm2696_vm0 = vmmov %vm2691_vm1  ;;  %v889_v48 = vld [vmem:[#allocation4 + $0x10] sm:$0xff] }
 0x23a   :  { %832 = vadd.xlane.f32.xlu0 %v723_v46  ;;  %931 = vadd.xlane.f32.xlu1 %v2139_v47  ;;  %v990_v47 = vld [vmem:[#allocation5 + $0x38] sm:$0xff] }
 0x23e   :  { %933 = vadd.xlane.f32.xlu0 %v910_v38  ;;  %935 = vadd.xlane.f32.xlu1 %v2152_v44  ;;  %v988_v44 = vld [vmem:[#allocation5 + $0x28] sm:$0xff]  ;;  %v891_v38 = vld [vmem:[#allocation4 + $0x20] sm:$0xff] }
 0x242   :  { %937 = vadd.xlane.f32.xlu0 %v912_v21  ;;  %939 = vadd.xlane.f32.xlu1 %v2165_v11 }
 0x246   :  { %941 = vadd.xlane.f32.xlu0 %v2175_v56  ;;  %943 = vadd.xlane.f32.xlu1 %v915_v10  ;;  %v985_v56 = vld [vmem:[#allocation5 + $0x10] sm:$0xff] }
 0x24a   :  { %945 = vadd.xlane.f32.xlu0 %v2107_v43  ;;  %947 = vadd.xlane.f32.xlu1 %v2189_v53  ;;  %v992_v43 = vld [vmem:[#allocation5 + $0x48] sm:$0xff] }
 0x24e   :  { %949 = vadd.xlane.f32.xlu0 %v2121_v7  ;;  %v1006_v33 = vpop.xlane.xlu0 %1005  ;;  %v987_v7 = vld [vmem:[#allocation5 + $0x20] sm:$0xff] }
 0x24f   :  { %v1034_v14 = vadd.f32 %v1006_v33, %v986_v59  ;;  %v2701_v59 = vsub.f32 %v1927_v52, %v1932_v55 }
 0x251   :  { %1050 = vst.msk [vmem:[#allocation5 + $0x18] sm:$0xff] %vm2681_vm5, %v1034_v14  ;;  %vm2697_vm5 = vmmov %vm2696_vm0  ;;  %v762_v33 = vmul.f32 1.442695, %v2701_v59  ;;  %v2702_v14 = vsub.f32 %v1937_v61, %v1951_v6  ;;  %v2713_v61 = vld [vmem:[#allocation13_spill] sm:$0xff] }
 0x252   :  { %v1010_v23 = vpop.xlane.xlu0 %1009 }
 0x253   :  { %v1036_v11 = vadd.f32 %v1010_v23, %v988_v44  ;;  %1436 = vpow2.f32 %v762_v33  ;;  %v778_v44 = vmul.f32 1.442695, %v2702_v14  ;;  %v2703_v23 = vld [vmem:[#allocation6_spill] sm:$0xff] }
 0x254   :  { %v2735_v14 = vld [vmem:[#allocation26_spill] sm:$0xff] }
 0x255   :  { %1052 = vst.msk [vmem:[#allocation5 + $0x28] sm:$0xff] %vm2682_vm7, %v1036_v11  ;;  %vm2698_vm7 = vmmov %vm2696_vm0  ;;  %v2704_v11 = vld [vmem:[#allocation7_spill] sm:$0xff]  ;;  %1438 = vpow2.f32 %v778_v44  ;;  %v2736_v44 = vld [vmem:[#allocation28_spill] sm:$0xff] }
 0x256   :  { %v1014_v31 = vpop.xlane.xlu0 %1013 }
 0x257   :  { %v1038_v32 = vadd.f32 %v1014_v31, %v990_v47  ;;  %v2705_v47 = vsub.f32 %v2703_v23, %v2704_v11  ;;  %v2737_v23 = vsub.f32 %v2735_v14, %v2736_v44 }
 0x258   :  { %v1004_v27 = vpop.xlane.xlu1 %1003 }
 0x259   :  { %1054 = vst.msk [vmem:[#allocation5 + $0x38] sm:$0xff] %vm2683_vm8, %v1038_v32  ;;  %v1033_v53 = vadd.f32 %v1004_v27, %v985_v56  ;;  %vm2699_vm8 = vmmov %vm2696_vm0  ;;  %v758_v31 = vmul.f32 1.442695, %v2705_v47  ;;  %v2706_v56 = vld [vmem:[#allocation8_spill] sm:$0xff]  ;;  %v2707_v32 = vld [vmem:[#allocation9_spill] sm:$0xff] }
 0x25a   :  { %v1018_v9 = vpop.xlane.xlu0 %1017  ;;  %v2708_v27 = vsub.f32 %v2706_v56, %v2707_v32  ;;  %v766_v11 = vmul.f32 1.442695, %v2737_v23 }
 0x25b   :  { %1049 = vst.msk [vmem:[#allocation5 + $0x10] sm:$0xff] %vm2684_vm10, %v1033_v53  ;;  %v1040_v39 = vadd.f32 %v1018_v9, %v992_v43  ;;  %vm2700_vm10 = vmmov %vm2696_vm0  ;;  %1440 = vpow2.f32 %v758_v31  ;;  %v2709_v53 = vld [vmem:[#allocation10_spill] sm:$0xff]  ;;  %v2710_v9 = vld [vmem:[#allocation12_spill] sm:$0xff] }
 0x25c   :  { %v1008_v15 = vpop.xlane.xlu1 %1007  ;;  %v764_v43 = vmul.f32 1.442695, %v2708_v27  ;;  %v737_v27 = vld [vmem:[#allocation3 + $0x58] sm:$0xff] }
 0x25d   :  { %1056 = vst.msk [vmem:[#allocation5 + $0x48] sm:$0xff] %vm2685_vm11, %v1040_v39  ;;  %v1035_v54 = vadd.f32 %v1008_v15, %v987_v7  ;;  %v2711_v7 = vsub.f32 %v2709_v53, %v2710_v9  ;;  %v1437_v55 = vpop.eup %1436  ;;  %v728_v39 = vld [vmem:[#allocation3 + $0x10] sm:$0xff]  ;;  %v2712_v15 = vld [vmem:[#allocation11_spill] sm:$0xff]  ;;  %vm2724_vm11 = vmmov %vm2696_vm0 }
 0x25e   :  { %v1022_v12 = vpop.xlane.xlu0 %1021  ;;  %1442 = vpow2.f32 %v764_v43  ;;  %v2714_v6 = vsub.f32 %v2712_v15, %v2713_v61  ;;  %v2739_v53 = vld [vmem:[#allocation27_spill] sm:$0xff]  ;;  %v2740_v9 = vld [vmem:[#allocation29_spill] sm:$0xff] }
 0x25f   :  { %1051 = vst.msk [vmem:[#allocation5 + $0x20] sm:$0xff] %vm2686_vm13, %v1035_v54  ;;  %v1042_v60 = vadd.f32 %v1022_v12, %v994_v42  ;;  %v774_v52 = vmul.f32 1.442695, %v2711_v7  ;;  %v2715_v54 = vld [vmem:[#allocation14_spill] sm:$0xff]  ;;  %v2716_v12 = vld [vmem:[#allocation16_spill] sm:$0xff]  ;;  %v2741_v7 = vsub.f32 %v2739_v53, %v2740_v9  ;;  %v727_v61 = vld [vmem:[#allocation3 + $0x8] sm:$0xff] }
 0x260   :  { %v1012_v26 = vpop.xlane.xlu1 %1011  ;;  %v780_v42 = vmul.f32 1.442695, %v2714_v6  ;;  %v2742_v6 = vld [vmem:[#allocation30_spill] sm:$0xff]  ;;  %v741_v9 = vld [vmem:[#allocation3 + $0x78] sm:$0xff] }
 0x261   :  { %1058 = vst.msk [vmem:[#allocation5 + $0x58] sm:$0xff] %vm2687_vm15, %v1042_v60  ;;  %v1037_v40 = vadd.f32 %v1012_v26, %v989_v29  ;;  %1444 = vpow2.f32 %v774_v52  ;;  %v2717_v29 = vsub.f32 %v2715_v54, %v2716_v12  ;;  %v792_v26 = vmul.f32 %v1437_v55, %v728_v39  ;;  %vm2731_vm15 = vmmov %vm2696_vm0  ;;  %v2397_v55 = vld [vmem:[#allocation5 + $0x8] sm:$0xff]  ;;  %v730_v53 = vld [vmem:[#allocation3 + $0x20] sm:$0xff] }
 0x262   :  { %v1026_v19 = vpop.xlane.xlu0 %1025  ;;  %1446 = vpow2.f32 %v780_v42  ;;  %v2388_v59 = vld [vmem:[#allocation5 + $0x10] sm:$0xff]  ;;  %v768_v52 = vmul.f32 1.442695, %v2741_v7 }
 0x263   :  { %1053 = vst.msk [vmem:[#allocation5 + $0x30] sm:$0xff] %vm2688_vm3, %v1037_v40  ;;  %v1044_v58 = vadd.f32 %v1026_v19, %v996_v13  ;;  %v760_v60 = vmul.f32 1.442695, %v2717_v29  ;;  %v1439_v13 = vpop.eup %1438  ;;  %v736_v19 = vld [vmem:[#allocation3 + $0x50] sm:$0xff]  ;;  %vm2738_vm3 = vmmov %vm2696_vm0  ;;  %v2403_v29 = vld [vmem:[#allocation5 + $0x18] sm:$0xff] }
 0x264   :  { %v1016_v30 = vpop.xlane.xlu1 %1015  ;;  %v2743_v42 = vld [vmem:[#allocation32_spill] sm:$0xff] }
 0x265   :  { %1060 = vst.msk [vmem:[#allocation5 + $0x68] sm:$0xff] %vm2689_vm6, %v1044_v58  ;;  %v1039_v16 = vadd.f32 %v1016_v30, %v991_v24  ;;  %v2718_v24 = vld [vmem:[#allocation15_spill] sm:$0xff]  ;;  %v2719_v58 = vld [vmem:[#allocation17_spill] sm:$0xff]  ;;  %1448 = vpow2.f32 %v760_v60  ;;  %vm1164_vm6 = vcmp.lt.f32.partialorder %v2388_v59, 1e-06  ;;  %v2744_v54 = vsub.f32 %v2742_v6, %v2743_v42 }
 0x266   :  { %v1030_v34 = vpop.xlane.xlu0 %1029  ;;  %v2720_v30 = vsub.f32 %v2718_v24, %v2719_v58 }
 0x267   :  { %1055 = vst.msk [vmem:[#allocation5 + $0x40] sm:$0xff] %vm2690_vm12, %v1039_v16  ;;  %v1046_v41 = vadd.f32 %v1030_v34, %v998_v50  ;;  %v2721_v34 = vld [vmem:[#allocation18_spill] sm:$0xff]  ;;  %v782_v12 = vmul.f32 1.442695, %v2744_v54  ;;  %vm1163_vm12 = vcmp.lt.f32.partialorder %v2397_v55, 1e-06 }
 0x268   :  { %v1020_v17 = vpop.xlane.xlu1 %1019  ;;  %v776_v50 = vmul.f32 1.442695, %v2720_v30  ;;  %v735_v30 = vld [vmem:[#allocation3 + $0x48] sm:$0xff]  ;;  %v2444_v7 = vld [vmem:[#allocation5 + $0x58] sm:$0xff] }
 0x269   :  { %1062 = vst.msk [vmem:[#allocation5 + $0x78] sm:$0xff] %vm2691_vm1, %v1046_v41  ;;  %v1041_v4 = vadd.f32 %v1020_v17, %v993_v20  ;;  %v2722_v20 = vld [vmem:[#allocation20_spill] sm:$0xff]  ;;  %vm2745_vm1 = vmmov %vm2696_vm0 }
 0x26a   :  { %v922_v25 = vpop.xlane.xlu0 %921  ;;  %v2723_v41 = vsub.f32 %v2721_v34, %v2722_v20  ;;  %1450 = vpow2.f32 %v776_v50  ;;  %v2748_v34 = vld [vmem:[#allocation33_spill] sm:$0xff]  ;;  %v2449_v42 = vld [vmem:[#allocation5 + $0x30] sm:$0xff] }
 0x26b   :  { %1057 = vst.msk [vmem:[#allocation5 + $0x50] sm:$0xff] %vm2692_vm14, %v1041_v4  ;;  %v952_v51 = vadd.f32 %v922_v25, %v888_v5  ;;  %v2373_v5 = vld [vmem:[#allocation5] sm:$0xff]  ;;  %v800_v4 = vmul.f32 %v1439_v13, %v736_v19  ;;  %v1441_v25 = vpop.eup %1440  ;;  %v2405_v13 = vld [vmem:[#allocation5 + $0x28] sm:$0xff]  ;;  %v1180_v19 = vsel %vm1164_vm6, 1.0, %v2388_v59  ;;  %vm2746_vm14 = vmmov %vm2696_vm0  ;;  %vm1168_vm6 = vcmp.lt.f32.partialorder %v2449_v42, 1e-06 }
 0x26c   :  { %v1024_v35 = vpop.xlane.xlu1 %1023  ;;  %v770_v17 = vmul.f32 1.442695, %v2723_v41  ;;  %vm1162_vm13 = vcmp.lt.f32.partialorder %v2373_v5, 1e-06 }
 0x26d   :  { %968 = vst.msk [vmem:[#allocation4 + $0x8] sm:$0xff] %vm2693_vm9, %v952_v51  ;;  %v1043_v37 = vadd.f32 %v1024_v35, %v995_v22  ;;  %v726_v51 = vld [vmem:[#allocation3] sm:$0xff]  ;;  %v2725_v35 = vld [vmem:[#allocation19_spill] sm:$0xff]  ;;  %vm1165_vm9 = vcmp.lt.f32.partialorder %v2403_v29, 1e-06 }
 0x26e   :  { %v926_v49 = vpop.xlane.xlu0 %925  ;;  %1452 = vpow2.f32 %v770_v17  ;;  %v2415_v17 = vld [vmem:[#allocation5 + $0x38] sm:$0xff] }
 0x26f   :  { %1059 = vst.msk [vmem:[#allocation5 + $0x60] sm:$0xff] %vm2694_vm2, %v1043_v37  ;;  %v954_v3 = vadd.f32 %v926_v49, %v890_v63  ;;  %v2726_v63 = vld [vmem:[#allocation21_spill] sm:$0xff]  ;;  %vm1167_vm2 = vcmp.lt.f32.partialorder %v2405_v13, 1e-06 }
 0x270   :  { %v1028_v36 = vpop.xlane.xlu1 %1027  ;;  %v2727_v37 = vsub.f32 %v2725_v35, %v2726_v63 }
 0x271   :  { %970 = vst.msk [vmem:[#allocation4 + $0x18] sm:$0xff] %vm2695_vm4, %v954_v3  ;;  %v1045_v28 = vadd.f32 %v1028_v36, %v997_v8  ;;  %v2728_v3 = vld [vmem:[#allocation22_spill] sm:$0xff]  ;;  %v2729_v36 = vld [vmem:[#allocation24_spill] sm:$0xff]  ;;  %vm1169_vm4 = vcmp.lt.f32.partialorder %v2415_v17, 1e-06 }
 0x272   :  { %v930_v1 = vpop.xlane.xlu0 %929  ;;  %v772_v49 = vmul.f32 1.442695, %v2727_v37  ;;  %v1179_v37 = vsel %vm1163_vm12, 1.0, %v2397_v55  ;;  %vm2755_vm12 = vmmov %vm2696_vm0 }
 0x273   :  { %1061 = vst.msk [vmem:[#allocation5 + $0x70] sm:$0xff] %vm2696_vm0, %v1045_v28  ;;  %v956_v0 = vadd.f32 %v930_v1, %v892_v2  ;;  %v2730_v2 = vsub.f32 %v2728_v3, %v2729_v36  ;;  %v1443_v1 = vpop.eup %1442  ;;  %v1181_v36 = vsel %vm1165_vm9, 1.0, %v2403_v29 }
 0x274   :  { %v920_v18 = vpop.xlane.xlu1 %919  ;;  %1454 = vpow2.f32 %v772_v49 }
 0x275   :  { %972 = vst.msk [vmem:[#allocation4 + $0x28] sm:$0xff] %vm2697_vm5, %v956_v0  ;;  %v951_v57 = vadd.f32 %v920_v18, %v887_v62  ;;  %v786_v28 = vmul.f32 1.442695, %v2730_v2  ;;  %v790_v62 = vmul.f32 %v1441_v25, %v726_v51  ;;  %v1445_v0 = vpop.eup %1444  ;;  %v2418_v51 = vld [vmem:[#allocation5 + $0x48] sm:$0xff]  ;;  %vm2750_vm5 = vmmov %vm2696_vm0 }
 0x276   :  { %v1447_v31 = vpop.eup %1446 }
 0x277   :  { %967 = vst.msk [vmem:[#allocation4] sm:$0xff] %vm2698_vm7, %v951_v57  ;;  %v734_v57 = vld [vmem:[#allocation3 + $0x40] sm:$0xff]  ;;  %1456 = vpow2.f32 %v786_v28  ;;  %v1449_v43 = vpop.eup %1448  ;;  %v801_v58 = vmul.f32 %v1447_v31, %v737_v27  ;;  %v733_v28 = vld [vmem:[#allocation3 + $0x38] sm:$0xff]  ;;  %vm1171_vm7 = vcmp.lt.f32.partialorder %v2418_v51, 1e-06 }
 0x278   :  { %v924_v45 = vpop.xlane.xlu1 %923  ;;  %v798_v56 = vmul.f32 %v1445_v0, %v734_v57  ;;  %v791_v24 = vmul.f32 %v1449_v43, %v727_v61  ;;  %v2431_v0 = vld [vmem:[#allocation5 + $0x20] sm:$0xff] }
 0x279   :  { %v953_v46 = vadd.f32 %v924_v45, %v889_v48  ;;  %v729_v48 = vld [vmem:[#allocation3 + $0x18] sm:$0xff]  ;;  %v1178_v45 = vsel %vm1162_vm13, 1.0, %v2373_v5  ;;  %vm2753_vm13 = vmmov %vm2696_vm0 }
 0x27a   :  { %v793_v32 = vmul.f32 %v1443_v1, %v729_v48  ;;  %v740_v48 = vld [vmem:[#allocation3 + $0x70] sm:$0xff] }
 0x27b   :  { %969 = vst.msk [vmem:[#allocation4 + $0x10] sm:$0xff] %vm2699_vm8, %v953_v46  ;;  %v2732_v46 = vld [vmem:[#allocation23_spill] sm:$0xff]  ;;  %vm1166_vm8 = vcmp.lt.f32.partialorder %v2431_v0, 1e-06 }
 0x27c   :  { %v928_v21 = vpop.xlane.xlu1 %927  ;;  %v1182_v6 = vsel %vm1166_vm8, 1.0, %v2431_v0 }
 0x27d   :  { %v955_v10 = vadd.f32 %v928_v21, %v891_v38  ;;  %v2733_v38 = vld [vmem:[#allocation25_spill] sm:$0xff] }
 0x27e   :  { %v2734_v21 = vsub.f32 %v2732_v46, %v2733_v38 }
 0x27f   :  { %971 = vst.msk [vmem:[#allocation4 + $0x20] sm:$0xff] %vm2700_vm10, %v955_v10  ;;  %vm2751_vm10 = vmmov %vm2696_vm0 }
 0x280   :  { %v788_v10 = vmul.f32 1.442695, %v2734_v21 }
 0x2a3   :  { %v811_v40 = vpop.xlane.xlu0 %810 }
 0x2a4   :  { %v840_v16 = vadd.f32 %v811_v40, %v792_v26  ;;  %v1451_v40 = vpop.eup %1450 }
 0x2a5   :  { %v1453_v50 = vpop.eup %1452 }
 0x2a6   :  { %857 = vst.msk [vmem:[#allocation3 + $0x10] sm:$0xff] %vm2724_vm11, %v840_v16  ;;  %v2747_v16 = vld [vmem:[#allocation31_spill] sm:$0xff]  ;;  %v1455_v3 = vpop.eup %1454  ;;  %vm2752_vm11 = vmmov %vm2696_vm0 }
 0x2a7   :  { %v827_v22 = vpop.xlane.xlu1 %826  ;;  %v2749_v20 = vsub.f32 %v2747_v16, %v2748_v34  ;;  %v1457_v1 = vpop.eup %1456  ;;  %v797_v44 = vmul.f32 %v1455_v3, %v733_v28  ;;  %v738_v34 = vld [vmem:[#allocation3 + $0x60] sm:$0xff] }
 0x2a8   :  { %v848_v8 = vadd.f32 %v827_v22, %v800_v4  ;;  %v732_v22 = vld [vmem:[#allocation3 + $0x30] sm:$0xff]  ;;  %v804_v31 = vmul.f32 %v1457_v1, %v740_v48  ;;  %v1082_v3 = vld [vmem:[#allocation2] sm:$0xff] }
 0x2a9   :  { %v784_v41 = vmul.f32 1.442695, %v2749_v20  ;;  %v796_v2 = vmul.f32 %v1453_v50, %v732_v22 }
 0x2aa   :  { %865 = vst.msk [vmem:[#allocation3 + $0x50] sm:$0xff] %vm2731_vm15, %v848_v8  ;;  %v799_v8 = vmul.f32 %v1451_v40, %v735_v30  ;;  %vm2754_vm15 = vmmov %vm2696_vm0 }
 0x2ab   :  { %v807_v18 = vpop.xlane.xlu0 %806 }
 0x2ac   :  { %v838_v33 = vadd.f32 %v807_v18, %v790_v62  ;;  %v1183_v62 = vsel %vm1167_vm2, 1.0, %v2405_v13  ;;  %vm2758_vm2 = vmmov %vm2696_vm0 }
 0x2ad   :  { %v1100_v47 = vld [vmem:[#allocation3 + $0x10] sm:$0xff] }
 0x2ae   :  { %1458 = vlog2.f32 %v1100_v47  ;;  %855 = vst.msk [vmem:[#allocation3] sm:$0xff] %vm2738_vm3, %v838_v33  ;;  %v1187_v47 = vsel %vm1171_vm7, 1.0, %v2418_v51  ;;  %vm1173_vm3 = vcmp.lt.f32.partialorder %v2444_v7, 1e-06 }
 0x2af   :  { %1460 = vrcp.f32 %v1178_v45  ;;  %v823_v39 = vpop.xlane.xlu1 %822  ;;  %v813_v15 = vpop.xlane.xlu0 %812 }
 0x2b0   :  { %1462 = vpow2.f32 %v788_v10  ;;  %v846_v60 = vadd.f32 %v823_v39, %v798_v56  ;;  %v841_v26 = vadd.f32 %v813_v15, %v793_v32  ;;  %v1185_v10 = vsel %vm1169_vm4, 1.0, %v2415_v17  ;;  %vm2759_vm4 = vmmov %vm2696_vm0 }
 0x2b1   :  { %1464 = vpow2.f32 %v766_v11  ;;  %v1084_v11 = vld [vmem:[#allocation2 + $0x10] sm:$0xff] }
 0x2b2   :  { %863 = vst.msk [vmem:[#allocation3 + $0x40] sm:$0xff] %vm2745_vm1, %v846_v60  ;;  %1466 = vpow2.f32 %v768_v52  ;;  %v1108_v40 = vld [vmem:[#allocation3 + $0x50] sm:$0xff]  ;;  %vm2756_vm1 = vmmov %vm2696_vm0 }
 0x2b3   :  { %858 = vst.msk [vmem:[#allocation3 + $0x18] sm:$0xff] %vm2746_vm14, %v841_v26  ;;  %v809_v4 = vpop.xlane.xlu1 %808  ;;  %v829_v25 = vpop.xlane.xlu0 %828  ;;  %1468 = vpow2.f32 %v782_v12  ;;  %v1196_v26 = vld [vmem:[#allocation4 + $0x10] sm:$0xff]  ;;  %vm2757_vm14 = vmmov %vm2696_vm0 }
 0x2b4   :  { %v839_v35 = vadd.f32 %v809_v4, %v791_v24  ;;  %v849_v63 = vadd.f32 %v829_v25, %v801_v58  ;;  %1470 = vrcp.f32 %v1180_v19  ;;  %vm2760_vm7 = vmmov %vm2756_vm1 }
 0x2b5   :  { %v1098_v49 = vld [vmem:[#allocation3] sm:$0xff]  ;;  %vm2761_vm8 = vmmov %vm2756_vm1 }
 0x2b6   :  { %1472 = vlog2.f32 %v1098_v49  ;;  %856 = vst.msk [vmem:[#allocation3 + $0x8] sm:$0xff] %vm2696_vm0, %v839_v35 }
 0x2b7   :  { %866 = vst.msk [vmem:[#allocation3 + $0x58] sm:$0xff] %vm2750_vm5, %v849_v63  ;;  %1474 = vpow2.f32 %v784_v41  ;;  %v819_v18 = vpop.xlane.xlu1 %818  ;;  %v825_v57 = vpop.xlane.xlu0 %824 }
 0x2b8   :  { %v1459_v45 = vpop.eup %1458  ;;  %1476 = vrcp.f32 %v1179_v37  ;;  %v844_v46 = vadd.f32 %v819_v18, %v796_v2  ;;  %v847_v38 = vadd.f32 %v825_v57, %v799_v8  ;;  %v2461_v2 = vld [vmem:[#allocation5 + $0x40] sm:$0xff]  ;;  %v1184_v18 = vsel %vm1168_vm6, 1.0, %v2449_v42 }
 0x2b9   :  { %v2433_v21 = vpop.eup %1460  ;;  %1478 = vrcp.f32 %v1181_v36  ;;  %v1119_v33 = vmul.f32 0.6931472, %v1459_v45  ;;  %v1106_v52 = vld [vmem:[#allocation3 + $0x40] sm:$0xff]  ;;  %v1189_v36 = vsel %vm1173_vm3, 1.0, %v2444_v7  ;;  %vm1170_vm9 = vcmp.lt.f32.partialorder %v2461_v2, 1e-06  ;;  %vm2765_vm3 = vmmov %vm2756_vm1 }
 0x2ba   :  { %v1101_v14 = vld [vmem:[#allocation3 + $0x18] sm:$0xff]  ;;  %v1463_v23 = vpop.eup %1462  ;;  %1480 = vrcp.f32 %v1183_v62  ;;  %861 = vst.msk [vmem:[#allocation3 + $0x30] sm:$0xff] %vm2751_vm10, %v844_v46  ;;  %v739_v46 = vld [vmem:[#allocation3 + $0x68] sm:$0xff]  ;;  %vm2762_vm10 = vmmov %vm2756_vm1 }
 0x2bb   :  { %864 = vst.msk [vmem:[#allocation3 + $0x48] sm:$0xff] %vm2752_vm11, %v847_v38  ;;  %v1465_v56 = vpop.eup %1464  ;;  %v1148_v32 = vadd.f32 %v1119_v33, %v1084_v11  ;;  %1482 = vlog2.f32 %v1101_v14  ;;  %v835_v27 = vpop.xlane.xlu1 %834  ;;  %v805_v24 = vmul.f32 %v1463_v23, %v741_v9  ;;  %v1085_v9 = vld [vmem:[#allocation2 + $0x18] sm:$0xff] }
 0x2bc   :  { %v821_v43 = vpop.xlane.xlu0 %820  ;;  %1484 = vrcp.f32 %v1185_v10  ;;  %v852_v39 = vadd.f32 %v835_v27, %v804_v31  ;;  %v1467_v61 = vpop.eup %1466  ;;  %v794_v19 = vmul.f32 %v1465_v56, %v730_v53  ;;  %v2476_v10 = vld [vmem:[#allocation5 + $0x68] sm:$0xff]  ;;  %v1194_v56 = vld [vmem:[#allocation4] sm:$0xff] }
 0x2bd   :  { %v845_v15 = vadd.f32 %v821_v43, %v797_v44  ;;  %1486 = vrcp.f32 %v1187_v47  ;;  %v1212_v54 = vmul.f32 %v1148_v32, %v2388_v59  ;;  %v1099_v12 = vld [vmem:[#allocation3 + $0x8] sm:$0xff]  ;;  %v1469_v60 = vpop.eup %1468  ;;  %v893_v47 = vld [vmem:[#allocation4 + $0x30] sm:$0xff]  ;;  %vm1175_vm0 = vcmp.lt.f32.partialorder %v2476_v10, 1e-06 }
 0x2be   :  { %1488 = vlog2.f32 %v1099_v12  ;;  %869 = vst.msk [vmem:[#allocation3 + $0x70] sm:$0xff] %vm2753_vm13, %v852_v39  ;;  %v1471_v58 = vpop.eup %1470  ;;  %v731_v59 = vld [vmem:[#allocation3 + $0x28] sm:$0xff]  ;;  %v1109_v63 = vld [vmem:[#allocation3 + $0x58] sm:$0xff]  ;;  %v802_v28 = vmul.f32 %v1469_v60, %v738_v34  ;;  %vm2763_vm13 = vmmov %vm2756_vm1 }
 0x2bf   :  { %862 = vst.msk [vmem:[#allocation3 + $0x38] sm:$0xff] %vm2754_vm15, %v845_v15  ;;  %v1228_v30 = vsub.f32 %v1196_v26, %v1212_v54  ;;  %1490 = vlog2.f32 %v1106_v52  ;;  %v815_v50 = vpop.xlane.xlu1 %814  ;;  %v795_v1 = vmul.f32 %v1467_v61, %v731_v59  ;;  %v2487_v52 = vld [vmem:[#allocation5 + $0x50] sm:$0xff]  ;;  %vm2764_vm15 = vmmov %vm2756_vm1 }
 0x2c0   :  { %v837_v16 = vpop.xlane.xlu0 %836  ;;  %v1473_v20 = vpop.eup %1472  ;;  %1492 = vrcp.f32 %v1182_v6  ;;  %v842_v41 = vadd.f32 %v815_v50, %v794_v19  ;;  %v1186_v6 = vsel %vm1170_vm9, 1.0, %v2461_v2  ;;  %vm1172_vm5 = vcmp.lt.f32.partialorder %v2487_v52, 1e-06  ;;  %vm2767_vm9 = vmmov %vm2756_vm1 }
 0x2c1   :  { %v853_v4 = vadd.f32 %v837_v16, %v805_v24  ;;  %v1475_v25 = vpop.eup %1474  ;;  %v1247_v22 = vmul.f32 %v1471_v58, %v1228_v30  ;;  %1494 = vlog2.f32 %v1108_v40  ;;  %v1115_v35 = vmul.f32 0.6931472, %v1473_v20  ;;  %v1104_v37 = vld [vmem:[#allocation3 + $0x30] sm:$0xff]  ;;  %v895_v58 = vld [vmem:[#allocation4 + $0x40] sm:$0xff]  ;;  %v894_v30 = vld [vmem:[#allocation4 + $0x38] sm:$0xff] }
 0x2c2   :  { %v1107_v49 = vld [vmem:[#allocation3 + $0x48] sm:$0xff]  ;;  %v2456_v8 = vpop.eup %1476  ;;  %1496 = vlog2.f32 %v1104_v37  ;;  %859 = vst.msk [vmem:[#allocation3 + $0x20] sm:$0xff] %vm2755_vm12, %v842_v41  ;;  %v803_v43 = vmul.f32 %v1475_v25, %v739_v46  ;;  %v2502_v41 = vld [vmem:[#allocation5 + $0x60] sm:$0xff]  ;;  %vm2766_vm12 = vmmov %vm2756_vm1 }
 0x2c3   :  { %870 = vst.msk [vmem:[#allocation3 + $0x78] sm:$0xff] %vm2756_vm1, %v853_v4  ;;  %v2465_v62 = vpop.eup %1478  ;;  %v1146_v57 = vadd.f32 %v1115_v35, %v1082_v3  ;;  %1498 = vlog2.f32 %v1107_v49  ;;  %v831_v48 = vpop.xlane.xlu1 %830  ;;  %v1083_v16 = vld [vmem:[#allocation2 + $0x8] sm:$0xff]  ;;  %v1197_v4 = vld [vmem:[#allocation4 + $0x18] sm:$0xff]  ;;  %vm1174_vm11 = vcmp.lt.f32.partialorder %v2502_v41, 1e-06 }
 0x2c4   :  { %1276 = vst.msk [vmem:[%s2618_s4 + $0x10] sm:$0xff] %vm2757_vm14, %v1247_v22  ;;  %v817_v45 = vpop.xlane.xlu0 %816  ;;  %v2474_v38 = vpop.eup %1480  ;;  %1500 = vlog2.f32 %v1109_v63  ;;  %v850_v33 = vadd.f32 %v831_v48, %v802_v28  ;;  %v896_v46 = vld [vmem:[#allocation4 + $0x48] sm:$0xff] }
 0x2c5   :  { %v843_v14 = vadd.f32 %v817_v45, %v795_v1  ;;  %v1483_v44 = vpop.eup %1482  ;;  %1502 = vrcp.f32 %v1189_v36  ;;  %v1210_v23 = vmul.f32 %v1146_v57, %v2373_v5  ;;  %v1112_v27 = vld [vmem:[#allocation3 + $0x70] sm:$0xff]  ;;  %v1188_v1 = vsel %vm1172_vm5, 1.0, %v2487_v52 }
 0x2c6   :  { %v1105_v11 = vld [vmem:[#allocation3 + $0x38] sm:$0xff]  ;;  %v2480_v31 = vpop.eup %1484  ;;  %1504 = vrcp.f32 %v1184_v18  ;;  %v1121_v32 = vmul.f32 0.6931472, %v1483_v44  ;;  %867 = vst.msk [vmem:[#allocation3 + $0x60] sm:$0xff] %vm2758_vm2, %v850_v33  ;;  %v897_v36 = vld [vmem:[#allocation4 + $0x50] sm:$0xff]  ;;  %v1195_v44 = vld [vmem:[#allocation4 + $0x8] sm:$0xff] }
 0x2c7   :  { %860 = vst.msk [vmem:[#allocation3 + $0x28] sm:$0xff] %vm2759_vm4, %v843_v14  ;;  %v2484_v53 = vpop.eup %1486  ;;  %v1226_v5 = vsub.f32 %v1194_v56, %v1210_v23  ;;  %1506 = vlog2.f32 %v1105_v11  ;;  %v932_v39 = vpop.xlane.xlu1 %931  ;;  %v1088_v14 = vld [vmem:[#allocation2 + $0x30] sm:$0xff]  ;;  %v2518_v56 = vld [vmem:[#allocation5 + $0x78] sm:$0xff]  ;;  %vm2768_vm2 = vmmov %vm2756_vm1 }
 0x2c8   :  { %v833_v15 = vpop.xlane.xlu0 %832  ;;  %v1489_v61 = vpop.eup %1488  ;;  %v1149_v54 = vadd.f32 %v1121_v32, %v1085_v9  ;;  %v957_v12 = vadd.f32 %v932_v39, %v893_v47  ;;  %1508 = vlog2.f32 %v1112_v27  ;;  %vm1177_vm6 = vcmp.lt.f32.partialorder %v2518_v56, 1e-06  ;;  %vm2769_vm4 = vmmov %vm2756_vm1 }
 0x2c9   :  { %v851_v60 = vadd.f32 %v833_v15, %v803_v43  ;;  %v1491_v26 = vpop.eup %1490  ;;  %v1243_v40 = vmul.f32 %v2433_v21, %v1226_v5  ;;  %v1117_v19 = vmul.f32 0.6931472, %v1489_v61  ;;  %v1102_v24 = vld [vmem:[#allocation3 + $0x20] sm:$0xff]  ;;  %v1191_v21 = vsel %vm1175_vm0, 1.0, %v2476_v10  ;;  %v1092_v15 = vld [vmem:[#allocation2 + $0x50] sm:$0xff]  ;;  %vm2770_vm0 = vmmov %vm2756_vm1 }
 0x2ca   :  { %v2493_v50 = vpop.eup %1492  ;;  %v1213_v34 = vmul.f32 %v1149_v54, %v2403_v29  ;;  %1510 = vlog2.f32 %v1102_v24  ;;  %v1113_v59 = vld [vmem:[#allocation3 + $0x78] sm:$0xff]  ;;  %973 = vst.msk [vmem:[#allocation4 + $0x30] sm:$0xff] %vm2760_vm7, %v957_v12  ;;  %v1131_v63 = vmul.f32 0.6931472, %v1491_v26  ;;  %v899_v12 = vld [vmem:[#allocation4 + $0x60] sm:$0xff]  ;;  %vm2771_vm5 = vmmov %vm2770_vm0 }
 0x2cb   :  { %868 = vst.msk [vmem:[#allocation3 + $0x68] sm:$0xff] %vm2761_vm8, %v851_v60  ;;  %v1495_v20 = vpop.eup %1494  ;;  %1512 = vrcp.f32 %v1186_v6  ;;  %v1147_v29 = vadd.f32 %v1117_v19, %v1083_v16  ;;  %v936_v25 = vpop.xlane.xlu1 %935  ;;  %v1091_v16 = vld [vmem:[#allocation2 + $0x48] sm:$0xff]  ;;  %vm2772_vm7 = vmmov %vm2770_vm0 }
 0x2cc   :  { %1274 = vst.msk [vmem:[%s2618_s4] sm:$0xff] %vm2762_vm10, %v1243_v40  ;;  %v934_v22 = vpop.xlane.xlu0 %933  ;;  %v1497_v35 = vpop.eup %1496  ;;  %v1229_v37 = vsub.f32 %v1197_v4, %v1213_v34  ;;  %v959_v49 = vadd.f32 %v936_v25, %v895_v58  ;;  %1514 = vlog2.f32 %v1113_v59  ;;  %v1135_v23 = vmul.f32 0.6931472, %v1495_v20  ;;  %v1089_v20 = vld [vmem:[#allocation2 + $0x38] sm:$0xff]  ;;  %vm2773_vm8 = vmmov %vm2770_vm0 }
 0x2cd   :  { %v958_v3 = vadd.f32 %v934_v22, %v894_v30  ;;  %v1499_v28 = vpop.eup %1498  ;;  %v1211_v18 = vmul.f32 %v1147_v29, %v2397_v55  ;;  %v1127_v57 = vmul.f32 0.6931472, %v1497_v35  ;;  %v1110_v48 = vld [vmem:[#allocation3 + $0x60] sm:$0xff]  ;;  %v898_v30 = vld [vmem:[#allocation4 + $0x58] sm:$0xff]  ;;  %v1190_v34 = vsel %vm1174_vm11, 1.0, %v2502_v41  ;;  %vm2774_vm10 = vmmov %vm2770_vm0 }
 0x2ce   :  { %v1103_v45 = vld [vmem:[#allocation3 + $0x28] sm:$0xff]  ;;  %v1501_v33 = vpop.eup %1500  ;;  %v1249_v11 = vmul.f32 %v2465_v62, %v1229_v37  ;;  %1516 = vlog2.f32 %v1110_v48  ;;  %975 = vst.msk [vmem:[#allocation4 + $0x40] sm:$0xff] %vm2763_vm13, %v959_v49  ;;  %v1090_v55 = vld [vmem:[#allocation2 + $0x40] sm:$0xff]  ;;  %v1133_v27 = vmul.f32 0.6931472, %v1499_v28  ;;  %v2520_v62 = vld [vmem:[#allocation5 + $0x70] sm:$0xff] }
 0x2cf   :  { %974 = vst.msk [vmem:[#allocation4 + $0x38] sm:$0xff] %vm2764_vm15, %v958_v3  ;;  %v2516_v47 = vpop.eup %1502  ;;  %v1227_v32 = vsub.f32 %v1195_v44, %v1211_v18  ;;  %1518 = vlog2.f32 %v1103_v45  ;;  %v1152_v43 = vadd.f32 %v1127_v57, %v1088_v14  ;;  %v940_v9 = vpop.xlane.xlu1 %939  ;;  %v1154_v61 = vadd.f32 %v1131_v63, %v1090_v55  ;;  %v1093_v35 = vld [vmem:[#allocation2 + $0x58] sm:$0xff]  ;;  %v1086_v14 = vld [vmem:[#allocation2 + $0x20] sm:$0xff]  ;;  %vm2775_vm11 = vmmov %vm2770_vm0 }
 0x2d0   :  { %v938_v5 = vpop.xlane.xlu0 %937  ;;  %v1505_v39 = vpop.eup %1504  ;;  %1520 = vrcp.f32 %v1191_v21  ;;  %1277 = vst.msk [vmem:[%s2618_s4 + $0x18] sm:$0xff] %vm2765_vm3, %v1249_v11  ;;  %v961_v6 = vadd.f32 %v940_v9, %v897_v36  ;;  %v1137_v40 = vmul.f32 0.6931472, %v1501_v33  ;;  %vm1176_vm14 = vcmp.lt.f32.partialorder %v2520_v62, 1e-06  ;;  %v901_v36 = vld [vmem:[#allocation4 + $0x70] sm:$0xff]  ;;  %vm2776_vm13 = vmmov %vm2770_vm0 }
 0x2d1   :  { %v960_v54 = vadd.f32 %v938_v5, %v896_v46  ;;  %v1507_v60 = vpop.eup %1506  ;;  %1522 = vrcp.f32 %v1188_v1  ;;  %v1245_v26 = vmul.f32 %v2456_v8, %v1227_v32  ;;  %v1216_v19 = vmul.f32 %v1152_v43, %v2449_v42  ;;  %v1200_v24 = vld [vmem:[#allocation4 + $0x30] sm:$0xff]  ;;  %v900_v33 = vld [vmem:[#allocation4 + $0x68] sm:$0xff]  ;;  %vm2777_vm15 = vmmov %vm2770_vm0 }
 0x2d2   :  { %v1111_v58 = vld [vmem:[#allocation3 + $0x68] sm:$0xff]  ;;  %v1129_v59 = vmul.f32 0.6931472, %v1507_v60  ;;  %977 = vst.msk [vmem:[#allocation4 + $0x50] sm:$0xff] %vm2766_vm12, %v961_v6  ;;  %v1509_v8 = vpop.eup %1508  ;;  %v1156_v21 = vadd.f32 %v1135_v23, %v1092_v15  ;;  %v1155_v4 = vadd.f32 %v1133_v27, %v1091_v16  ;;  %v1218_v63 = vmul.f32 %v1154_v61, %v2461_v2  ;;  %vm2778_vm3 = vmmov %vm2770_vm0 }
 0x2d3   :  { %1524 = vlog2.f32 %v1111_v58  ;;  %976 = vst.msk [vmem:[#allocation4 + $0x48] sm:$0xff] %vm2756_vm1, %v960_v54  ;;  %v1232_v42 = vsub.f32 %v1200_v24, %v1216_v19  ;;  %v944_v29 = vpop.xlane.xlu1 %943  ;;  %v1193_v1 = vsel %vm1177_vm6, 1.0, %v2518_v56  ;;  %v1157_v46 = vadd.f32 %v1137_v40, %v1093_v35  ;;  %v902_v24 = vld [vmem:[#allocation4 + $0x78] sm:$0xff]  ;;  %v1096_v58 = vld [vmem:[#allocation2 + $0x70] sm:$0xff]  ;;  %vm2779_vm6 = vmmov %vm2770_vm0 }
 0x2d4   :  { %1275 = vst.msk [vmem:[%s2618_s4 + $0x8] sm:$0xff] %vm2767_vm9, %v1245_v26  ;;  %v942_v25 = vpop.xlane.xlu0 %941  ;;  %v1511_v22 = vpop.eup %1510  ;;  %v1153_v37 = vadd.f32 %v1129_v59, %v1089_v20  ;;  %v963_v49 = vadd.f32 %v944_v29, %v899_v12  ;;  %1526 = vrcp.f32 %v1190_v34  ;;  %v1192_v2 = vsel %vm1176_vm14, 1.0, %v2520_v62  ;;  %vm2780_vm12 = vmmov %vm2770_vm0 }
 0x2d5   :  { %v962_v3 = vadd.f32 %v942_v25, %v898_v30  ;;  %v1513_v28 = vpop.eup %1512  ;;  %v1123_v18 = vmul.f32 0.6931472, %v1511_v22  ;;  %v1255_v57 = vmul.f32 %v1505_v39, %v1232_v42  ;;  %v1202_v48 = vld [vmem:[#allocation4 + $0x40] sm:$0xff]  ;;  %v1143_v55 = vmul.f32 0.6931472, %v1509_v8  ;;  %v1087_v8 = vld [vmem:[#allocation2 + $0x28] sm:$0xff]  ;;  %vm2781_vm1 = vmmov %vm2770_vm0 }
 0x2d6   :  { %v1201_v45 = vld [vmem:[#allocation4 + $0x38] sm:$0xff]  ;;  %v1234_v44 = vsub.f32 %v1202_v48, %v1218_v63  ;;  %v1217_v23 = vmul.f32 %v1153_v37, %v2415_v17  ;;  %979 = vst.msk [vmem:[#allocation4 + $0x60] sm:$0xff] %vm2768_vm2, %v963_v49  ;;  %v1515_v11 = vpop.eup %1514  ;;  %v1220_v27 = vmul.f32 %v1156_v21, %v2487_v52  ;;  %v1219_v43 = vmul.f32 %v1155_v4, %v2418_v51  ;;  %v1094_v51 = vld [vmem:[#allocation2 + $0x60] sm:$0xff]  ;;  %vm2782_vm14 = vmmov %vm2770_vm0 }
 0x2d7   :  { %978 = vst.msk [vmem:[#allocation4 + $0x58] sm:$0xff] %vm2769_vm4, %v962_v3  ;;  %v1150_v32 = vadd.f32 %v1123_v18, %v1086_v14  ;;  %v948_v9 = vpop.xlane.xlu1 %947  ;;  %1528 = vrcp.f32 %v1192_v2  ;;  %v1221_v19 = vmul.f32 %v1157_v46, %v2444_v7  ;;  %v1198_v30 = vld [vmem:[#allocation4 + $0x20] sm:$0xff]  ;;  %v1145_v42 = vmul.f32 0.6931472, %v1515_v11  ;;  %v1095_v18 = vld [vmem:[#allocation2 + $0x68] sm:$0xff]  ;;  %vm2783_vm9 = vmmov %vm2770_vm0 }
 0x2d8   :  { %1280 = vst.msk [vmem:[%s2618_s4 + $0x30] sm:$0xff] %vm2770_vm0, %v1255_v57  ;;  %v946_v5 = vpop.xlane.xlu0 %945  ;;  %v1517_v39 = vpop.eup %1516  ;;  %v1259_v17 = vmul.f32 %v1513_v28, %v1234_v44  ;;  %v1233_v15 = vsub.f32 %v1201_v45, %v1217_v23  ;;  %v965_v61 = vadd.f32 %v948_v9, %v901_v36  ;;  %v1160_v4 = vadd.f32 %v1143_v55, %v1096_v58  ;;  %vm2784_vm2 = vmmov %vm2770_vm0 }
 0x2d9   :  { %v964_v6 = vadd.f32 %v946_v5, %v900_v33  ;;  %v1519_v54 = vpop.eup %1518  ;;  %v1214_v12 = vmul.f32 %v1150_v32, %v2431_v0  ;;  %v1139_v60 = vmul.f32 0.6931472, %v1517_v39  ;;  %v1204_v26 = vld [vmem:[#allocation4 + $0x50] sm:$0xff]  ;;  %1530 = vrcp.f32 %v1193_v1 }
 0x2da   :  { %v1203_v40 = vld [vmem:[#allocation4 + $0x48] sm:$0xff]  ;;  %v1521_v52 = vpop.eup %1520  ;;  %v1125_v16 = vmul.f32 0.6931472, %v1519_v54  ;;  %1282 = vst.msk [vmem:[%s2618_s4 + $0x40] sm:$0xff] %vm2771_vm5, %v1259_v17  ;;  %v1257_v34 = vmul.f32 %v2480_v31, %v1233_v15  ;;  %v1236_v59 = vsub.f32 %v1204_v26, %v1220_v27  ;;  %v1224_v33 = vmul.f32 %v1160_v4, %v2520_v62 }
 0x2db   :  { %v1235_v0 = vsub.f32 %v1203_v40, %v1219_v43  ;;  %981 = vst.msk [vmem:[#allocation4 + $0x70] sm:$0xff] %vm2772_vm7, %v965_v61  ;;  %v1523_v7 = vpop.eup %1522  ;;  %v1230_v20 = vsub.f32 %v1198_v30, %v1214_v12  ;;  %v1158_v21 = vadd.f32 %v1139_v60, %v1094_v51 }
 0x2dc   :  { %980 = vst.msk [vmem:[#allocation4 + $0x68] sm:$0xff] %vm2773_vm8, %v964_v6  ;;  %v950_v29 = vpop.xlane.xlu0 %949  ;;  %v1151_v22 = vadd.f32 %v1125_v16, %v1087_v8  ;;  %v1263_v31 = vmul.f32 %v1523_v7, %v1236_v59 }
 0x2dd   :  { %v1525_v25 = vpop.eup %1524  ;;  %1281 = vst.msk [vmem:[%s2618_s4 + $0x38] sm:$0xff] %vm2774_vm10, %v1257_v34  ;;  %v1261_v35 = vmul.f32 %v2484_v53, %v1235_v0  ;;  %v966_v63 = vadd.f32 %v950_v29, %v902_v24  ;;  %v1251_v37 = vmul.f32 %v2493_v50, %v1230_v20  ;;  %v1222_v3 = vmul.f32 %v1158_v21, %v2502_v41  ;;  %v1206_v36 = vld [vmem:[#allocation4 + $0x60] sm:$0xff]  ;;  %v1097_v50 = vld [vmem:[#allocation2 + $0x78] sm:$0xff]  ;;  %v1199_v41 = vld [vmem:[#allocation4 + $0x28] sm:$0xff] }
 0x2de   :  { %v1141_v49 = vmul.f32 0.6931472, %v1525_v25  ;;  %v1205_v28 = vld [vmem:[#allocation4 + $0x58] sm:$0xff]  ;;  %v1215_v57 = vmul.f32 %v1151_v22, %v2405_v13  ;;  %1284 = vst.msk [vmem:[%s2618_s4 + $0x50] sm:$0xff] %vm2775_vm11, %v1263_v31  ;;  %v1527_v48 = vpop.eup %1526  ;;  %v1161_v14 = vadd.f32 %v1145_v42, %v1097_v50 }
 0x2df   :  { %1283 = vst.msk [vmem:[%s2618_s4 + $0x48] sm:$0xff] %vm2776_vm13, %v1261_v35  ;;  %v1237_v53 = vsub.f32 %v1205_v28, %v1221_v19  ;;  %v1238_v13 = vsub.f32 %v1206_v36, %v1222_v3 }
 0x2e0   :  { %982 = vst.msk [vmem:[#allocation4 + $0x78] sm:$0xff] %vm2777_vm15, %v966_v63  ;;  %v1159_v1 = vadd.f32 %v1141_v49, %v1095_v18  ;;  %v1231_v45 = vsub.f32 %v1199_v41, %v1215_v57 }
 0x2e1   :  { %1278 = vst.msk [vmem:[%s2618_s4 + $0x20] sm:$0xff] %vm2778_vm3, %v1251_v37  ;;  %v1265_v46 = vmul.f32 %v2516_v47, %v1237_v53  ;;  %v1267_v2 = vmul.f32 %v1527_v48, %v1238_v13  ;;  %v1529_v27 = vpop.eup %1528 }
 0x2e2   :  { %v1208_v44 = vld [vmem:[#allocation4 + $0x70] sm:$0xff]  ;;  %v1223_v23 = vmul.f32 %v1159_v1, %v2476_v10  ;;  %v1253_v55 = vmul.f32 %v2474_v38, %v1231_v45  ;;  %v1225_v38 = vmul.f32 %v1161_v14, %v2518_v56 }
 0x2e3   :  { %v1207_v11 = vld [vmem:[#allocation4 + $0x68] sm:$0xff]  ;;  %1285 = vst.msk [vmem:[%s2618_s4 + $0x58] sm:$0xff] %vm2779_vm6, %v1265_v46  ;;  %v1240_v32 = vsub.f32 %v1208_v44, %v1224_v33  ;;  %v1531_v5 = vpop.eup %1530 }
 0x2e4   :  { %1286 = vst.msk [vmem:[%s2618_s4 + $0x60] sm:$0xff] %vm2780_vm12, %v1267_v2  ;;  %v1239_v47 = vsub.f32 %v1207_v11, %v1223_v23 }
 0x2e5   :  { %1279 = vst.msk [vmem:[%s2618_s4 + $0x28] sm:$0xff] %vm2781_vm1, %v1253_v55  ;;  %v1271_v10 = vmul.f32 %v1529_v27, %v1240_v32 }
 0x2e6   :  { %v1269_v62 = vmul.f32 %v1521_v52, %v1239_v47 }
 0x2e7   :  { %v1209_v43 = vld [vmem:[#allocation4 + $0x78] sm:$0xff]  ;;  %1288 = vst.msk [vmem:[%s2618_s4 + $0x70] sm:$0xff] %vm2782_vm14, %v1271_v10 }
 0x2e8   :  { %v1241_v9 = vsub.f32 %v1209_v43, %v1225_v38  ;;  %1287 = vst.msk [vmem:[%s2618_s4 + $0x68] sm:$0xff] %vm2783_vm9, %v1269_v62 }
 0x2ea   :  { %v1273_v39 = vmul.f32 %v1531_v5, %v1241_v9 }
 0x2ec   :  { %1289 = vst.msk [vmem:[%s2618_s4 + $0x78] sm:$0xff] %vm2784_vm2, %v1273_v39 }

</bundles_post_ra>
